<compile_context>
chip_gen: v7x
topology: tpu7x:2x2x1
jax: 0.10.0
libtpu: 0.0.40
codegen_flags: <defaults>
</compile_context>

<pallas_src>
import functools

import jax
import jax.numpy as jnp
import numpy as np
from jax.experimental import pallas as pl
from jax.experimental.pallas import tpu as pltpu

_EPS = 1e-5
_LANE = 128


def _derive_vmem_budget():
    """Scoped-VMEM limit + per-call tile budget from the actual hardware."""
    cap = 0
    try:
        cap = int(getattr(pltpu.get_tpu_info(), "vmem_capacity_bytes", 0) or 0)
    except Exception:
        cap = 0
    if cap <= 0:
        cap = 64 * 1024 * 1024                       # assume v7x-like (most restrictive)
    limit = min(cap * 3 // 4, 96 * 1024 * 1024)      # 48 MiB on v7x, 96 MiB on v5e/v6e
    return int(limit), int(limit // 2)


_VMEM_LIMIT, _TILE_BUDGET = _derive_vmem_budget()


# ------------------------------ Pallas kernels ------------------------------

def _stats_kernel(x_ref, sum_ref, sq_ref):
    """Row-tiled grid reduction: per-lane sum and sum-of-squares (f32)."""
    @pl.when(pl.program_id(0) == 0)
    def _():
        sum_ref[...] = jnp.zeros_like(sum_ref)
        sq_ref[...] = jnp.zeros_like(sq_ref)

    x = x_ref[...].astype(jnp.float32)
    sum_ref[...] += jnp.sum(x, axis=0, keepdims=True)
    sq_ref[...] += jnp.sum(x * x, axis=0, keepdims=True)


def _affine_relu_kernel(x_ref, scale_ref, shift_ref, o_ref):
    """relu(x * scale + shift) -> bf16; math kept in f32 (v5e-safe)."""
    y = x_ref[...].astype(jnp.float32) * scale_ref[...] + shift_ref[...]
    o_ref[...] = jnp.maximum(y, 0.0).astype(o_ref.dtype)


def _conv_stats_kernel(cols_ref, w_ref, h_ref, sum_ref, sq_ref):
    """conv1 folded-K matmul fused with BN2 batch-stat accumulation."""
    @pl.when(pl.program_id(0) == 0)
    def _():
        sum_ref[...] = jnp.zeros_like(sum_ref)
        sq_ref[...] = jnp.zeros_like(sq_ref)

    acc = jnp.dot(cols_ref[...], w_ref[...], preferred_element_type=jnp.float32)
    h_ref[...] = acc.astype(h_ref.dtype)
    sum_ref[...] += jnp.sum(acc, axis=0, keepdims=True)
    sq_ref[...] += jnp.sum(acc * acc, axis=0, keepdims=True)


def _conv_stats_skip_kernel(cols_ref, w_ref, xs_ref, wsk_ref,
                            h_ref, sum_ref, sq_ref, sksum_ref, sksq_ref):
    """conv1 matmul + BN2 stats + skip(1x1) batch stats (skip output discarded)."""
    @pl.when(pl.program_id(0) == 0)
    def _():
        sum_ref[...] = jnp.zeros_like(sum_ref)
        sq_ref[...] = jnp.zeros_like(sq_ref)
        sksum_ref[...] = jnp.zeros_like(sksum_ref)
        sksq_ref[...] = jnp.zeros_like(sksq_ref)

    acc = jnp.dot(cols_ref[...], w_ref[...], preferred_element_type=jnp.float32)
    h_ref[...] = acc.astype(h_ref.dtype)
    sum_ref[...] += jnp.sum(acc, axis=0, keepdims=True)
    sq_ref[...] += jnp.sum(acc * acc, axis=0, keepdims=True)

    sk = jnp.dot(xs_ref[...], wsk_ref[...], preferred_element_type=jnp.float32)
    sksum_ref[...] += jnp.sum(sk, axis=0, keepdims=True)
    sksq_ref[...] += jnp.sum(sk * sk, axis=0, keepdims=True)


def _conv_residual_kernel(cols_ref, w_ref, b_ref, res_ref, o_ref):
    """conv2 matmul + bias + identity residual add, fused."""
    acc = jnp.dot(cols_ref[...], w_ref[...], preferred_element_type=jnp.float32)
    o_ref[...] = acc + b_ref[...] + res_ref[...].astype(jnp.float32)


def _conv_skipbn_kernel(cols_ref, w_ref, b_ref, xs_ref, wsk_ref,
                        sscale_ref, sshift_ref, o_ref):
    """conv2 matmul + bias + (recomputed 1x1 skip -> BN affine) residual, fused."""
    acc = jnp.dot(cols_ref[...], w_ref[...], preferred_element_type=jnp.float32)
    sk = jnp.dot(xs_ref[...], wsk_ref[...], preferred_element_type=jnp.float32)
    o_ref[...] = acc + b_ref[...] + sk * sscale_ref[...] + sshift_ref[...]


# ------------------------------ small helpers --------------------------------

def _round_up(n, m):
    return (n + m - 1) // m * m


def _choose_tm(m_rows, row_bytes, resident_bytes=0):
    """Biggest row tile (mult of 16) whose double-buffered bytes fit the tile
    budget AFTER subtracting the resident full-block VMEM (v7x 64 MiB safety)."""
    budget = max(_TILE_BUDGET - resident_bytes, 2 * 1024 * 1024)
    tm = 1024
    while tm > 16 and 2 * tm * row_bytes > budget:
        tm //= 2
    return max(min(tm, _round_up(m_rows, 16)), 16)


def _pad_lanes(a, target):
    pad = target - a.shape[-1]
    return jnp.pad(a, [(0, 0)] * (a.ndim - 1) + [(0, pad)]) if pad else a


def _pad_rows(a, target_rows):
    pad = target_rows - a.shape[0]
    return jnp.pad(a, ((0, pad), (0, 0))) if pad else a


def _row_spec(tm, cols):
    return pl.BlockSpec((tm, cols), lambda i: (i, 0))


def _vec_spec(cols):
    return pl.BlockSpec((1, cols), lambda i: (0, 0))


def _full_spec(shape):
    return pl.BlockSpec(shape, lambda i: (0, 0))


def _cparams(semantics):
    return pltpu.CompilerParams(dimension_semantics=semantics,
                                vmem_limit_bytes=_VMEM_LIMIT)


def _im2col_3x3(a_nhwc, stride):
    """Folded im2col over TRUE channels: (N,H,W,C) -> (N*Ho*Wo, 9*C), taps on K."""
    n, h, w, c = a_nhwc.shape
    ho = (h - 1) // stride + 1
    wo = (w - 1) // stride + 1
    ap = jnp.pad(a_nhwc, ((0, 0), (1, 1), (1, 1), (0, 0)))
    taps = []
    for kh in range(3):
        for kw in range(3):
            taps.append(ap[:, kh:kh + stride * (ho - 1) + 1:stride,
                           kw:kw + stride * (wo - 1) + 1:stride, :])
    return jnp.concatenate(taps, axis=-1).reshape(n * ho * wo, 9 * c)


def _fold_conv_weight(w_oihw, k_pad, n_pad):
    """(O,I,KH,KW) -> (k_pad, n_pad) bf16, row order (kh, kw, i) to match im2col."""
    o, i, kh, kw = w_oihw.shape
    wt = jnp.transpose(w_oihw, (2, 3, 1, 0)).reshape(kh * kw * i, o)
    return jnp.pad(wt, ((0, k_pad - kh * kw * i), (0, n_pad - o))).astype(jnp.bfloat16)


# --------------------------- tiled pallas_call wrappers -----------------------

def _batch_stats(x_p, tm):
    mp, c = x_p.shape
    return pl.pallas_call(
        _stats_kernel,
        out_shape=(jax.ShapeDtypeStruct((1, c), jnp.float32),
                   jax.ShapeDtypeStruct((1, c), jnp.float32)),
        grid=(mp // tm,),
        in_specs=[_row_spec(tm, c)],
        out_specs=(_vec_spec(c), _vec_spec(c)),
        compiler_params=_cparams(("arbitrary",)),
    )(x_p)


def _affine_relu(x_p, scale, shift, tm):
    mp, c = x_p.shape
    return pl.pallas_call(
        _affine_relu_kernel,
        out_shape=jax.ShapeDtypeStruct((mp, c), jnp.bfloat16),
        grid=(mp // tm,),
        in_specs=[_row_spec(tm, c), _vec_spec(c), _vec_spec(c)],
        out_specs=_row_spec(tm, c),
        compiler_params=_cparams(("parallel",)),
    )(x_p, scale, shift)


def _conv_with_stats(cols_p, w, tm):
    mp, k = cols_p.shape
    co = w.shape[1]
    return pl.pallas_call(
        _conv_stats_kernel,
        out_shape=(jax.ShapeDtypeStruct((mp, co), jnp.bfloat16),
                   jax.ShapeDtypeStruct((1, co), jnp.float32),
                   jax.ShapeDtypeStruct((1, co), jnp.float32)),
        grid=(mp // tm,),
        in_specs=[_row_spec(tm, k), _full_spec((k, co))],
        out_specs=(_row_spec(tm, co), _vec_spec(co), _vec_spec(co)),
        compiler_params=_cparams(("arbitrary",)),
    )(cols_p, w)


def _conv_with_stats_skip(cols_p, w, xs_p, wsk, tm):
    mp, k = cols_p.shape
    co = w.shape[1]
    ci = xs_p.shape[1]
    cs = wsk.shape[1]
    return pl.pallas_call(
        _conv_stats_skip_kernel,
        out_shape=(jax.ShapeDtypeStruct((mp, co), jnp.bfloat16),
                   jax.ShapeDtypeStruct((1, co), jnp.float32),
                   jax.ShapeDtypeStruct((1, co), jnp.float32),
                   jax.ShapeDtypeStruct((1, cs), jnp.float32),
                   jax.ShapeDtypeStruct((1, cs), jnp.float32)),
        grid=(mp // tm,),
        in_specs=[_row_spec(tm, k), _full_spec((k, co)),
                  _row_spec(tm, ci), _full_spec((ci, cs))],
        out_specs=(_row_spec(tm, co), _vec_spec(co), _vec_spec(co),
                   _vec_spec(cs), _vec_spec(cs)),
        compiler_params=_cparams(("arbitrary",)),
    )(cols_p, w, xs_p, wsk)


def _conv_residual(cols_p, w, b, res_p, tm):
    mp, k = cols_p.shape
    co = w.shape[1]
    return pl.pallas_call(
        _conv_residual_kernel,
        out_shape=jax.ShapeDtypeStruct((mp, co), jnp.float32),
        grid=(mp // tm,),
        in_specs=[_row_spec(tm, k), _full_spec((k, co)), _vec_spec(co),
                  _row_spec(tm, co)],
        out_specs=_row_spec(tm, co),
        compiler_params=_cparams(("parallel",)),
    )(cols_p, w, b, res_p)


def _conv_skipbn(cols_p, w, b, xs_p, wsk, sscale, sshift, tm):
    mp, k = cols_p.shape
    co = w.shape[1]
    ci = xs_p.shape[1]
    return pl.pallas_call(
        _conv_skipbn_kernel,
        out_shape=jax.ShapeDtypeStruct((mp, co), jnp.float32),
        grid=(mp // tm,),
        in_specs=[_row_spec(tm, k), _full_spec((k, co)), _vec_spec(co),
                  _row_spec(tm, ci), _full_spec((ci, co)),
                  _vec_spec(co), _vec_spec(co)],
        out_specs=_row_spec(tm, co),
        compiler_params=_cparams(("parallel",)),
    )(cols_p, w, b, xs_p, wsk, sscale, sshift)


# ------------------------------ forward pass ---------------------------------

def resblock_forward(x_nchw, params, *, stride, has_skip):
    n, cin, h, w = x_nchw.shape
    chid = int(params['conv1_b'].shape[0])
    cout = int(params['conv2_b'].shape[0])
    cin_p = _round_up(cin, _LANE)
    chid_p = _round_up(chid, _LANE)
    cout_p = _round_up(cout, _LANE)

    x_nhwc = jnp.transpose(x_nchw, (0, 2, 3, 1)).astype(jnp.float32)   # (N,H,W,Cin)

    # ---- BN1 (batch stats) + ReLU on the W-folded (N*H, W*Cin) view ----------
    rows0 = n * h
    wc = w * cin
    x2d = x_nhwc.reshape(rows0, wc)
    tm0 = _choose_tm(rows0, wc * 6)
    rp0 = _round_up(rows0, tm0)
    x2d_p = _pad_rows(x2d, rp0)
    s1, q1 = _batch_stats(x2d_p, tm0)                                  # (1, W*Cin)
    m0 = n * h * w
    sum_c = jnp.sum(s1.reshape(w, cin), axis=0)
    sq_c = jnp.sum(q1.reshape(w, cin), axis=0)
    mean1 = sum_c / m0
    # NOTE: E[x^2]-mean^2 in f32 -- fine at this tolerance/magnitude.
    inv1 = jax.lax.rsqrt(sq_c / m0 - mean1 * mean1 + _EPS)
    scale1 = (params['bn1_gamma'] * inv1).astype(jnp.float32)          # (Cin,)
    shift1 = (params['bn1_beta'] - mean1 * scale1).astype(jnp.float32)
    a1 = _affine_relu(x2d_p,
                      jnp.tile(scale1, w).reshape(1, wc),
                      jnp.tile(shift1, w).reshape(1, wc),
                      tm0)[:rows0].reshape(n, h, w, cin)               # bf16

    # ---- conv1 (3x3, stride) folded-K matmul fused with BN2 (+skip) stats ----
    ho = (h - 1) // stride + 1
    wo = (w - 1) // stride + 1
    m1 = n * ho * wo
    k1p = _round_up(9 * cin, _LANE)                 # K folded over TRUE channels
    cols1 = _pad_lanes(_im2col_3x3(a1, stride), k1p)                   # (m1, k1p) bf16
    w1 = _fold_conv_weight(params['conv1_w'], k1p, chid_p)
    # conv1 bias omitted: exact no-op under the batch-stat BN2 that follows.

    if has_skip:
        xs = x_nhwc[:, ::stride, ::stride, :].reshape(m1, cin)
        xs_bf = _pad_lanes(xs.astype(jnp.bfloat16), cin_p)             # (m1, cin_p)
        wsk = jnp.pad(params['skip_w'].reshape(cout, cin).T,
                      ((0, cin_p - cin), (0, cout_p - cout))).astype(jnp.bfloat16)

    resident1 = 2 * (k1p * chid_p * 2) + (2 * cin_p * cout_p * 2 if has_skip else 0)
    row_bytes1 = k1p * 2 + chid_p * 2 + (cin_p * 2 if has_skip else 0)
    tm1 = _choose_tm(m1, row_bytes1, resident1)
    mp1 = _round_up(m1, tm1)
    cols1_p = _pad_rows(cols1, mp1)

    if has_skip:
        h1, s2, q2, ssk, qsk = _conv_with_stats_skip(
            cols1_p, w1, _pad_rows(xs_bf, mp1), wsk, tm1)
    else:
        h1, s2, q2 = _conv_with_stats(cols1_p, w1, tm1)

    # ---- BN2 affine folding (glue) + affine+ReLU pass over h1 -> a2 (bf16) ----
    g2 = _pad_lanes(params['bn2_gamma'].reshape(1, -1).astype(jnp.float32), chid_p)
    be2 = _pad_lanes(params['bn2_beta'].reshape(1, -1).astype(jnp.float32), chid_p)
    mean2 = s2 / m1
    inv2 = jax.lax.rsqrt(q2 / m1 - mean2 * mean2 + _EPS)
    scale2 = g2 * inv2
    shift2 = be2 - mean2 * scale2
    a2 = _affine_relu(h1, scale2, shift2, tm1)[:m1, :chid].reshape(n, ho, wo, chid)

    # ---- conv2 (3x3, stride 1) fused with residual / recomputed skip-BN ------
    k2p = _round_up(9 * chid, _LANE)
    cols2 = _pad_lanes(_im2col_3x3(a2, 1), k2p)                        # (m1, k2p) bf16
    w2 = _fold_conv_weight(params['conv2_w'], k2p, cout_p)
    bias2 = _pad_lanes(params['conv2_b'].reshape(1, -1).astype(jnp.float32), cout_p)

    resident2 = 2 * (k2p * cout_p * 2) + (2 * cin_p * cout_p * 2 if has_skip else 0)
    row_bytes2 = k2p * 2 + cout_p * 4 + (cin_p * 2 if has_skip else cout_p * 4)
    tm2 = _choose_tm(m1, row_bytes2, resident2)
    mp2 = _round_up(m1, tm2)
    cols2_p = _pad_rows(cols2, mp2)

    if has_skip:
        gs = _pad_lanes(params['skip_bn_gamma'].reshape(1, -1).astype(jnp.float32), cout_p)
        bs = _pad_lanes(params['skip_bn_beta'].reshape(1, -1).astype(jnp.float32), cout_p)
        mean_s = ssk / m1
        inv_s = jax.lax.rsqrt(qsk / m1 - mean_s * mean_s + _EPS)
        scale_s = gs * inv_s
        shift_s = bs - mean_s * scale_s
        out_flat = _conv_skipbn(cols2_p, w2, bias2, _pad_rows(xs_bf, mp2), wsk,
                                scale_s, shift_s, tm2)
    else:
        # identity branch: stride==1 and Cin==Cout, so M0==M1.
        res = _pad_rows(_pad_lanes(x_nhwc.reshape(m1, cin), cout_p), mp2)
        out_flat = _conv_residual(cols2_p, w2, bias2, res, tm2)

    out = out_flat[:m1, :cout].reshape(n, ho, wo, cout)
    # TODO(synk): emit the consumer's layout directly from out_specs to skip
    #             this final XLA transpose back to NCHW.
    return jnp.transpose(out, (0, 3, 1, 2))


# ------------------------ parameter init & JAX reference ---------------------

def init_params(key, in_size, hidden_size, out_size, stride):
    has_skip = (stride != 1) or (in_size != out_size)
    ks = jax.random.split(key, 10)

    def conv_w(k, co, ci, kh, kw):
        bound = 1.0 / np.sqrt(ci * kh * kw)
        return jax.random.uniform(k, (co, ci, kh, kw), jnp.float32, -bound, bound)

    p = dict(
        bn1_gamma=1.0 + 0.1 * jax.random.normal(ks[0], (in_size,), jnp.float32),
        bn1_beta=0.1 * jax.random.normal(ks[1], (in_size,), jnp.float32),
        conv1_w=conv_w(ks[2], hidden_size, in_size, 3, 3),
        conv1_b=0.1 * jax.random.normal(ks[3], (hidden_size,), jnp.float32),
        bn2_gamma=1.0 + 0.1 * jax.random.normal(ks[4], (hidden_size,), jnp.float32),
        bn2_beta=0.1 * jax.random.normal(ks[5], (hidden_size,), jnp.float32),
        conv2_w=conv_w(ks[6], out_size, hidden_size, 3, 3),
        conv2_b=0.1 * jax.random.normal(ks[7], (out_size,), jnp.float32),
    )
    if has_skip:
        p['skip_w'] = conv_w(ks[8], out_size, in_size, 1, 1)
        p['skip_bn_gamma'] = 1.0 + 0.1 * jax.random.normal(ks[9], (out_size,), jnp.float32)
        p['skip_bn_beta'] = jnp.zeros((out_size,), jnp.float32)
    return p, has_skip


def resblock_reference(x, p, *, stride, has_skip):
    def bn(z, g, b):
        m = jnp.mean(z, axis=(0, 2, 3), keepdims=True)
        v = jnp.mean(jnp.square(z - m), axis=(0, 2, 3), keepdims=True)
        return (z - m) * jax.lax.rsqrt(v + _EPS) * g.reshape(1, -1, 1, 1) + b.reshape(1, -1, 1, 1)

    def conv(z, w, b, s, pad):
        y = jax.lax.conv_general_dilated(
            z, w, (s, s), [(pad, pad), (pad, pad)],
            dimension_numbers=('NCHW', 'OIHW', 'NCHW'))
        return y if b is None else y + b.reshape(1, -1, 1, 1)

    h = conv(jax.nn.relu(bn(x, p['bn1_gamma'], p['bn1_beta'])),
             p['conv1_w'], p['conv1_b'], stride, 1)
    h = conv(jax.nn.relu(bn(h, p['bn2_gamma'], p['bn2_beta'])),
             p['conv2_w'], p['conv2_b'], 1, 1)
    if has_skip:
        s = bn(conv(x, p['skip_w'], None, stride, 0),
               p['skip_bn_gamma'], p['skip_bn_beta'])
    else:
        s = x
    return s + h


# ------------------------------------ main -----------------------------------

if __name__ == "__main__":
    key = jax.random.PRNGKey(0)

    configs = [
        # (in_size, hidden_size, out_size, stride)  -> projection-skip branch
        (4, 8, 8, 2),
        # identity-skip branch
        (8, 16, 8, 1),
    ]

    for idx, (cin, chid, cout, stride) in enumerate(configs):
        kp, kx = jax.random.split(jax.random.fold_in(key, idx))
        params, has_skip = init_params(kp, cin, chid, cout, stride)
        x = jax.random.normal(kx, (2, cin, 16, 16), jnp.float32)   # NCHW like PyTorch

        fwd = jax.jit(functools.partial(resblock_forward, stride=stride, has_skip=has_skip))
        out = jax.block_until_ready(fwd(x, params))

        ref = jax.block_until_ready(
            resblock_reference(x, params, stride=stride, has_skip=has_skip))

        assert out.shape == ref.shape, (out.shape, ref.shape)
        np.testing.assert_allclose(np.asarray(out), np.asarray(ref), rtol=3e-2, atol=3e-2)

    print("KERNEL_OK")
</pallas_src>

<mosaic_0001>
module attributes {stable_mosaic.version = 11 : i64} {
  func.func @_stats_kernel(%arg0: i32, %arg1: memref<32x64xf32, #tpu.memory_space<vmem>>, %arg2: memref<1x64xf32, #tpu.memory_space<vmem>>, %arg3: memref<1x64xf32, #tpu.memory_space<vmem>>) attributes {dimension_semantics = [#tpu.dimension_semantics<arbitrary>], iteration_bounds = array<i64: 1>, scalar_prefetch = 0 : i64, scratch_operands = 0 : i64, tpu.core_type = #tpu.core_type<tc>, window_params = [{transform_indices = @transform_0, window_bounds = array<i64: 32, 64>}, {pipeline_mode = #tpu.pipeline_mode<synchronous>, transform_indices = @transform_1, window_bounds = array<i64: 1, 64>}, {pipeline_mode = #tpu.pipeline_mode<synchronous>, transform_indices = @transform_2, window_bounds = array<i64: 1, 64>}]} {
    %c0_i32 = arith.constant 0 : i32
    %0 = arith.cmpi eq, %arg0, %c0_i32 : i32
    %1 = arith.extui %0 : i1 to i32
    %c0_i32_0 = arith.constant 0 : i32
    %2 = arith.cmpi ne, %1, %c0_i32_0 : i32
    scf.if %2 {
      %cst_11 = arith.constant 0.000000e+00 : f32
      %15 = vector.broadcast %cst_11 : f32 to vector<1x64xf32>
      %c0_12 = arith.constant 0 : index
      %c0_13 = arith.constant 0 : index
      %16 = vector.load %arg2[%c0_12, %c0_13] : memref<1x64xf32, #tpu.memory_space<vmem>>, vector<1x64xf32>
      tpu.vector_store %arg2[%c0_12, %c0_13], %15 {strides = array<i32>} : memref<1x64xf32, #tpu.memory_space<vmem>>, vector<1x64xf32>,
      %cst_14 = arith.constant 0.000000e+00 : f32
      %17 = vector.broadcast %cst_14 : f32 to vector<1x64xf32>
      %c0_15 = arith.constant 0 : index
      %c0_16 = arith.constant 0 : index
      %18 = vector.load %arg3[%c0_15, %c0_16] : memref<1x64xf32, #tpu.memory_space<vmem>>, vector<1x64xf32>
      tpu.vector_store %arg3[%c0_15, %c0_16], %17 {strides = array<i32>} : memref<1x64xf32, #tpu.memory_space<vmem>>, vector<1x64xf32>,
    } else {
    }
    %c0 = arith.constant 0 : index
    %c0_1 = arith.constant 0 : index
    %3 = vector.load %arg1[%c0, %c0_1] : memref<32x64xf32, #tpu.memory_space<vmem>>, vector<32x64xf32>
    %c0_2 = arith.constant 0 : index
    %c0_3 = arith.constant 0 : index
    %4 = vector.load %arg2[%c0_2, %c0_3] : memref<1x64xf32, #tpu.memory_space<vmem>>, vector<1x64xf32>
    %cst = arith.constant dense<0.000000e+00> : vector<64xf32>
    %5 = vector.multi_reduction <add>, %3, %cst [0] : vector<32x64xf32> to vector<64xf32>
    %6 = vector.shape_cast %5 : vector<64xf32> to vector<1x64xf32>
    %7 = arith.addf %4, %6 : vector<1x64xf32>
    %c0_4 = arith.constant 0 : index
    %c0_5 = arith.constant 0 : index
    %8 = vector.load %arg2[%c0_4, %c0_5] : memref<1x64xf32, #tpu.memory_space<vmem>>, vector<1x64xf32>
    tpu.vector_store %arg2[%c0_4, %c0_5], %7 {strides = array<i32>} : memref<1x64xf32, #tpu.memory_space<vmem>>, vector<1x64xf32>,
    %c0_6 = arith.constant 0 : index
    %c0_7 = arith.constant 0 : index
    %9 = vector.load %arg3[%c0_6, %c0_7] : memref<1x64xf32, #tpu.memory_space<vmem>>, vector<1x64xf32>
    %10 = arith.mulf %3, %3 : vector<32x64xf32>
    %cst_8 = arith.constant dense<0.000000e+00> : vector<64xf32>
    %11 = vector.multi_reduction <add>, %10, %cst_8 [0] : vector<32x64xf32> to vector<64xf32>
    %12 = vector.shape_cast %11 : vector<64xf32> to vector<1x64xf32>
    %13 = arith.addf %9, %12 : vector<1x64xf32>
    %c0_9 = arith.constant 0 : index
    %c0_10 = arith.constant 0 : index
    %14 = vector.load %arg3[%c0_9, %c0_10] : memref<1x64xf32, #tpu.memory_space<vmem>>, vector<1x64xf32>
    tpu.vector_store %arg3[%c0_9, %c0_10], %13 {strides = array<i32>} : memref<1x64xf32, #tpu.memory_space<vmem>>, vector<1x64xf32>,
    return
  }
  func.func @transform_0(%arg0: i32) -> (i32, i32) {
    %c0_i32 = arith.constant 0 : i32
    %c0_i32_0 = arith.constant 0 : i32
    return %arg0, %c0_i32 : i32, i32
  }
  func.func @transform_1(%arg0: i32) -> (i32, i32) {
    %c0_i32 = arith.constant 0 : i32
    %c0_i32_0 = arith.constant 0 : i32
    %c0_i32_1 = arith.constant 0 : i32
    return %c0_i32, %c0_i32_0 : i32, i32
  }
  func.func @transform_2(%arg0: i32) -> (i32, i32) {
    %c0_i32 = arith.constant 0 : i32
    %c0_i32_0 = arith.constant 0 : i32
    %c0_i32_1 = arith.constant 0 : i32
    return %c0_i32, %c0_i32_0 : i32, i32
  }
}

module attributes {stable_mosaic.version = 11 : i64} {
  func.func @_affine_relu_kernel(%arg0: i32, %arg1: memref<32x64xf32, #tpu.memory_space<vmem>>, %arg2: memref<1x64xf32, #tpu.memory_space<vmem>>, %arg3: memref<1x64xf32, #tpu.memory_space<vmem>>, %arg4: memref<32x64xbf16, #tpu.memory_space<vmem>>) attributes {dimension_semantics = [#tpu.dimension_semantics<parallel>], iteration_bounds = array<i64: 1>, scalar_prefetch = 0 : i64, scratch_operands = 0 : i64, tpu.core_type = #tpu.core_type<tc>, window_params = [{transform_indices = @transform_0, window_bounds = array<i64: 32, 64>}, {pipeline_mode = #tpu.pipeline_mode<synchronous>, transform_indices = @transform_1, window_bounds = array<i64: 1, 64>}, {pipeline_mode = #tpu.pipeline_mode<synchronous>, transform_indices = @transform_2, window_bounds = array<i64: 1, 64>}, {transform_indices = @transform_3, window_bounds = array<i64: 32, 64>}]} {
    %c0 = arith.constant 0 : index
    %c0_0 = arith.constant 0 : index
    %0 = vector.load %arg1[%c0, %c0_0] : memref<32x64xf32, #tpu.memory_space<vmem>>, vector<32x64xf32>
    %c0_1 = arith.constant 0 : index
    %c0_2 = arith.constant 0 : index
    %1 = vector.load %arg2[%c0_1, %c0_2] : memref<1x64xf32, #tpu.memory_space<vmem>>, vector<1x64xf32>
    %2 = vector.broadcast %1 : vector<1x64xf32> to vector<32x64xf32>
    %3 = arith.mulf %0, %2 : vector<32x64xf32>
    %c0_3 = arith.constant 0 : index
    %c0_4 = arith.constant 0 : index
    %4 = vector.load %arg3[%c0_3, %c0_4] : memref<1x64xf32, #tpu.memory_space<vmem>>, vector<1x64xf32>
    %5 = vector.broadcast %4 : vector<1x64xf32> to vector<32x64xf32>
    %6 = arith.addf %3, %5 : vector<32x64xf32>
    %cst = arith.constant 0.000000e+00 : f32
    %7 = vector.broadcast %cst : f32 to vector<32x64xf32>
    %8 = arith.maximumf %6, %7 : vector<32x64xf32>
    %9 = arith.truncf %8 : vector<32x64xf32> to vector<32x64xbf16>
    %c0_5 = arith.constant 0 : index
    %c0_6 = arith.constant 0 : index
    %10 = vector.load %arg4[%c0_5, %c0_6] : memref<32x64xbf16, #tpu.memory_space<vmem>>, vector<32x64xbf16>
    tpu.vector_store %arg4[%c0_5, %c0_6], %9 {strides = array<i32>} : memref<32x64xbf16, #tpu.memory_space<vmem>>, vector<32x64xbf16>,
    return
  }
  func.func @transform_0(%arg0: i32) -> (i32, i32) {
    %c0_i32 = arith.constant 0 : i32
    %c0_i32_0 = arith.constant 0 : i32
    return %arg0, %c0_i32 : i32, i32
  }
  func.func @transform_1(%arg0: i32) -> (i32, i32) {
    %c0_i32 = arith.constant 0 : i32
    %c0_i32_0 = arith.constant 0 : i32
    %c0_i32_1 = arith.constant 0 : i32
    return %c0_i32, %c0_i32_0 : i32, i32
  }
  func.func @transform_2(%arg0: i32) -> (i32, i32) {
    %c0_i32 = arith.constant 0 : i32
    %c0_i32_0 = arith.constant 0 : i32
    %c0_i32_1 = arith.constant 0 : i32
    return %c0_i32, %c0_i32_0 : i32, i32
  }
  func.func @transform_3(%arg0: i32) -> (i32, i32) {
    %c0_i32 = arith.constant 0 : i32
    %c0_i32_0 = arith.constant 0 : i32
    return %arg0, %c0_i32 : i32, i32
  }
}

module attributes {stable_mosaic.version = 11 : i64} {
  func.func @_conv_stats_skip_kernel(%arg0: i32, %arg1: memref<128x128xbf16, #tpu.memory_space<vmem>>, %arg2: memref<128x128xbf16, #tpu.memory_space<vmem>>, %arg3: memref<128x128xbf16, #tpu.memory_space<vmem>>, %arg4: memref<128x128xbf16, #tpu.memory_space<vmem>>, %arg5: memref<128x128xbf16, #tpu.memory_space<vmem>>, %arg6: memref<1x128xf32, #tpu.memory_space<vmem>>, %arg7: memref<1x128xf32, #tpu.memory_space<vmem>>, %arg8: memref<1x128xf32, #tpu.memory_space<vmem>>, %arg9: memref<1x128xf32, #tpu.memory_space<vmem>>) attributes {dimension_semantics = [#tpu.dimension_semantics<arbitrary>], iteration_bounds = array<i64: 1>, scalar_prefetch = 0 : i64, scratch_operands = 0 : i64, tpu.core_type = #tpu.core_type<tc>, window_params = [{transform_indices = @transform_0, window_bounds = array<i64: 128, 128>}, {pipeline_mode = #tpu.pipeline_mode<synchronous>, transform_indices = @transform_1, window_bounds = array<i64: 128, 128>}, {transform_indices = @transform_2, window_bounds = array<i64: 128, 128>}, {pipeline_mode = #tpu.pipeline_mode<synchronous>, transform_indices = @transform_3, window_bounds = array<i64: 128, 128>}, {transform_indices = @transform_4, window_bounds = array<i64: 128, 128>}, {pipeline_mode = #tpu.pipeline_mode<synchronous>, transform_indices = @transform_5, window_bounds = array<i64: 1, 128>}, {pipeline_mode = #tpu.pipeline_mode<synchronous>, transform_indices = @transform_6, window_bounds = array<i64: 1, 128>}, {pipeline_mode = #tpu.pipeline_mode<synchronous>, transform_indices = @transform_7, window_bounds = array<i64: 1, 128>}, {pipeline_mode = #tpu.pipeline_mode<synchronous>, transform_indices = @transform_8, window_bounds = array<i64: 1, 128>}]} {
    %c0_i32 = arith.constant 0 : i32
    %0 = arith.cmpi eq, %arg0, %c0_i32 : i32
    %1 = arith.extui %0 : i1 to i32
    %c0_i32_0 = arith.constant 0 : i32
    %2 = arith.cmpi ne, %1, %c0_i32_0 : i32
    scf.if %2 {
      %cst_31 = arith.constant 0.000000e+00 : f32
      %33 = vector.broadcast %cst_31 : f32 to vector<1x128xf32>
      %c0_32 = arith.constant 0 : index
      %c0_33 = arith.constant 0 : index
      %34 = vector.load %arg6[%c0_32, %c0_33] : memref<1x128xf32, #tpu.memory_space<vmem>>, vector<1x128xf32>
      tpu.vector_store %arg6[%c0_32, %c0_33], %33 {strides = array<i32>} : memref<1x128xf32, #tpu.memory_space<vmem>>, vector<1x128xf32>,
      %cst_34 = arith.constant 0.000000e+00 : f32
      %35 = vector.broadcast %cst_34 : f32 to vector<1x128xf32>
      %c0_35 = arith.constant 0 : index
      %c0_36 = arith.constant 0 : index
      %36 = vector.load %arg7[%c0_35, %c0_36] : memref<1x128xf32, #tpu.memory_space<vmem>>, vector<1x128xf32>
      tpu.vector_store %arg7[%c0_35, %c0_36], %35 {strides = array<i32>} : memref<1x128xf32, #tpu.memory_space<vmem>>, vector<1x128xf32>,
      %cst_37 = arith.constant 0.000000e+00 : f32
      %37 = vector.broadcast %cst_37 : f32 to vector<1x128xf32>
      %c0_38 = arith.constant 0 : index
      %c0_39 = arith.constant 0 : index
      %38 = vector.load %arg8[%c0_38, %c0_39] : memref<1x128xf32, #tpu.memory_space<vmem>>, vector<1x128xf32>
      tpu.vector_store %arg8[%c0_38, %c0_39], %37 {strides = array<i32>} : memref<1x128xf32, #tpu.memory_space<vmem>>, vector<1x128xf32>,
      %cst_40 = arith.constant 0.000000e+00 : f32
      %39 = vector.broadcast %cst_40 : f32 to vector<1x128xf32>
      %c0_41 = arith.constant 0 : index
      %c0_42 = arith.constant 0 : index
      %40 = vector.load %arg9[%c0_41, %c0_42] : memref<1x128xf32, #tpu.memory_space<vmem>>, vector<1x128xf32>
      tpu.vector_store %arg9[%c0_41, %c0_42], %39 {strides = array<i32>} : memref<1x128xf32, #tpu.memory_space<vmem>>, vector<1x128xf32>,
    } else {
    }
    %c0 = arith.constant 0 : index
    %c0_1 = arith.constant 0 : index
    %3 = vector.load %arg1[%c0, %c0_1] : memref<128x128xbf16, #tpu.memory_space<vmem>>, vector<128x128xbf16>
    %c0_2 = arith.constant 0 : index
    %c0_3 = arith.constant 0 : index
    %4 = vector.load %arg2[%c0_2, %c0_3] : memref<128x128xbf16, #tpu.memory_space<vmem>>, vector<128x128xbf16>
    %cst = arith.constant dense<0.000000e+00> : vector<128x128xf32>
    %5 = tpu.matmul %3, %4, %cst {dimension_numbers = #tpu.dot_dimension_numbers<[1], [0], [0], [1], [0, 0, 1, 1], [], []>} : vector<128x128xbf16>, vector<128x128xbf16>, vector<128x128xf32> -> vector<128x128xf32>
    %6 = arith.truncf %5 : vector<128x128xf32> to vector<128x128xbf16>
    %c0_4 = arith.constant 0 : index
    %c0_5 = arith.constant 0 : index
    %7 = vector.load %arg5[%c0_4, %c0_5] : memref<128x128xbf16, #tpu.memory_space<vmem>>, vector<128x128xbf16>
    tpu.vector_store %arg5[%c0_4, %c0_5], %6 {strides = array<i32>} : memref<128x128xbf16, #tpu.memory_space<vmem>>, vector<128x128xbf16>,
    %c0_6 = arith.constant 0 : index
    %c0_7 = arith.constant 0 : index
    %8 = vector.load %arg6[%c0_6, %c0_7] : memref<1x128xf32, #tpu.memory_space<vmem>>, vector<1x128xf32>
    %cst_8 = arith.constant dense<0.000000e+00> : vector<128xf32>
    %9 = vector.multi_reduction <add>, %5, %cst_8 [0] : vector<128x128xf32> to vector<128xf32>
    %10 = vector.shape_cast %9 : vector<128xf32> to vector<1x128xf32>
    %11 = arith.addf %8, %10 : vector<1x128xf32>
    %c0_9 = arith.constant 0 : index
    %c0_10 = arith.constant 0 : index
    %12 = vector.load %arg6[%c0_9, %c0_10] : memref<1x128xf32, #tpu.memory_space<vmem>>, vector<1x128xf32>
    tpu.vector_store %arg6[%c0_9, %c0_10], %11 {strides = array<i32>} : memref<1x128xf32, #tpu.memory_space<vmem>>, vector<1x128xf32>,
    %c0_11 = arith.constant 0 : index
    %c0_12 = arith.constant 0 : index
    %13 = vector.load %arg7[%c0_11, %c0_12] : memref<1x128xf32, #tpu.memory_space<vmem>>, vector<1x128xf32>
    %14 = arith.mulf %5, %5 : vector<128x128xf32>
    %cst_13 = arith.constant dense<0.000000e+00> : vector<128xf32>
    %15 = vector.multi_reduction <add>, %14, %cst_13 [0] : vector<128x128xf32> to vector<128xf32>
    %16 = vector.shape_cast %15 : vector<128xf32> to vector<1x128xf32>
    %17 = arith.addf %13, %16 : vector<1x128xf32>
    %c0_14 = arith.constant 0 : index
    %c0_15 = arith.constant 0 : index
    %18 = vector.load %arg7[%c0_14, %c0_15] : memref<1x128xf32, #tpu.memory_space<vmem>>, vector<1x128xf32>
    tpu.vector_store %arg7[%c0_14, %c0_15], %17 {strides = array<i32>} : memref<1x128xf32, #tpu.memory_space<vmem>>, vector<1x128xf32>,
    %c0_16 = arith.constant 0 : index
    %c0_17 = arith.constant 0 : index
    %19 = vector.load %arg3[%c0_16, %c0_17] : memref<128x128xbf16, #tpu.memory_space<vmem>>, vector<128x128xbf16>
    %c0_18 = arith.constant 0 : index
    %c0_19 = arith.constant 0 : index
    %20 = vector.load %arg4[%c0_18, %c0_19] : memref<128x128xbf16, #tpu.memory_space<vmem>>, vector<128x128xbf16>
    %cst_20 = arith.constant dense<0.000000e+00> : vector<128x128xf32>
    %21 = tpu.matmul %19, %20, %cst_20 {dimension_numbers = #tpu.dot_dimension_numbers<[1], [0], [0], [1], [0, 0, 1, 1], [], []>} : vector<128x128xbf16>, vector<128x128xbf16>, vector<128x128xf32> -> vector<128x128xf32>
    %c0_21 = arith.constant 0 : index
    %c0_22 = arith.constant 0 : index
    %22 = vector.load %arg8[%c0_21, %c0_22] : memref<1x128xf32, #tpu.memory_space<vmem>>, vector<1x128xf32>
    %cst_23 = arith.constant dense<0.000000e+00> : vector<128xf32>
    %23 = vector.multi_reduction <add>, %21, %cst_23 [0] : vector<128x128xf32> to vector<128xf32>
    %24 = vector.shape_cast %23 : vector<128xf32> to vector<1x128xf32>
    %25 = arith.addf %22, %24 : vector<1x128xf32>
    %c0_24 = arith.constant 0 : index
    %c0_25 = arith.constant 0 : index
    %26 = vector.load %arg8[%c0_24, %c0_25] : memref<1x128xf32, #tpu.memory_space<vmem>>, vector<1x128xf32>
    tpu.vector_store %arg8[%c0_24, %c0_25], %25 {strides = array<i32>} : memref<1x128xf32, #tpu.memory_space<vmem>>, vector<1x128xf32>,
    %c0_26 = arith.constant 0 : index
    %c0_27 = arith.constant 0 : index
    %27 = vector.load %arg9[%c0_26, %c0_27] : memref<1x128xf32, #tpu.memory_space<vmem>>, vector<1x128xf32>
    %28 = arith.mulf %21, %21 : vector<128x128xf32>
    %cst_28 = arith.constant dense<0.000000e+00> : vector<128xf32>
    %29 = vector.multi_reduction <add>, %28, %cst_28 [0] : vector<128x128xf32> to vector<128xf32>
    %30 = vector.shape_cast %29 : vector<128xf32> to vector<1x128xf32>
    %31 = arith.addf %27, %30 : vector<1x128xf32>
    %c0_29 = arith.constant 0 : index
    %c0_30 = arith.constant 0 : index
    %32 = vector.load %arg9[%c0_29, %c0_30] : memref<1x128xf32, #tpu.memory_space<vmem>>, vector<1x128xf32>
    tpu.vector_store %arg9[%c0_29, %c0_30], %31 {strides = array<i32>} : memref<1x128xf32, #tpu.memory_space<vmem>>, vector<1x128xf32>,
    return
  }
  func.func @transform_0(%arg0: i32) -> (i32, i32) {
    %c0_i32 = arith.constant 0 : i32
    %c0_i32_0 = arith.constant 0 : i32
    return %arg0, %c0_i32 : i32, i32
  }
  func.func @transform_1(%arg0: i32) -> (i32, i32) {
    %c0_i32 = arith.constant 0 : i32
    %c0_i32_0 = arith.constant 0 : i32
    %c0_i32_1 = arith.constant 0 : i32
    return %c0_i32, %c0_i32_0 : i32, i32
  }
  func.func @transform_2(%arg0: i32) -> (i32, i32) {
    %c0_i32 = arith.constant 0 : i32
    %c0_i32_0 = arith.constant 0 : i32
    return %arg0, %c0_i32 : i32, i32
  }
  func.func @transform_3(%arg0: i32) -> (i32, i32) {
    %c0_i32 = arith.constant 0 : i32
    %c0_i32_0 = arith.constant 0 : i32
    %c0_i32_1 = arith.constant 0 : i32
    return %c0_i32, %c0_i32_0 : i32, i32
  }
  func.func @transform_4(%arg0: i32) -> (i32, i32) {
    %c0_i32 = arith.constant 0 : i32
    %c0_i32_0 = arith.constant 0 : i32
    return %arg0, %c0_i32 : i32, i32
  }
  func.func @transform_5(%arg0: i32) -> (i32, i32) {
    %c0_i32 = arith.constant 0 : i32
    %c0_i32_0 = arith.constant 0 : i32
    %c0_i32_1 = arith.constant 0 : i32
    return %c0_i32, %c0_i32_0 : i32, i32
  }
  func.func @transform_6(%arg0: i32) -> (i32, i32) {
    %c0_i32 = arith.constant 0 : i32
    %c0_i32_0 = arith.constant 0 : i32
    %c0_i32_1 = arith.constant 0 : i32
    return %c0_i32, %c0_i32_0 : i32, i32
  }
  func.func @transform_7(%arg0: i32) -> (i32, i32) {
    %c0_i32 = arith.constant 0 : i32
    %c0_i32_0 = arith.constant 0 : i32
    %c0_i32_1 = arith.constant 0 : i32
    return %c0_i32, %c0_i32_0 : i32, i32
  }
  func.func @transform_8(%arg0: i32) -> (i32, i32) {
    %c0_i32 = arith.constant 0 : i32
    %c0_i32_0 = arith.constant 0 : i32
    %c0_i32_1 = arith.constant 0 : i32
    return %c0_i32, %c0_i32_0 : i32, i32
  }
}

module attributes {stable_mosaic.version = 11 : i64} {
  func.func @_affine_relu_kernel(%arg0: i32, %arg1: memref<128x128xbf16, #tpu.memory_space<vmem>>, %arg2: memref<1x128xf32, #tpu.memory_space<vmem>>, %arg3: memref<1x128xf32, #tpu.memory_space<vmem>>, %arg4: memref<128x128xbf16, #tpu.memory_space<vmem>>) attributes {dimension_semantics = [#tpu.dimension_semantics<parallel>], iteration_bounds = array<i64: 1>, scalar_prefetch = 0 : i64, scratch_operands = 0 : i64, tpu.core_type = #tpu.core_type<tc>, window_params = [{transform_indices = @transform_0, window_bounds = array<i64: 128, 128>}, {pipeline_mode = #tpu.pipeline_mode<synchronous>, transform_indices = @transform_1, window_bounds = array<i64: 1, 128>}, {pipeline_mode = #tpu.pipeline_mode<synchronous>, transform_indices = @transform_2, window_bounds = array<i64: 1, 128>}, {transform_indices = @transform_3, window_bounds = array<i64: 128, 128>}]} {
    %c0 = arith.constant 0 : index
    %c0_0 = arith.constant 0 : index
    %0 = vector.load %arg1[%c0, %c0_0] : memref<128x128xbf16, #tpu.memory_space<vmem>>, vector<128x128xbf16>
    %1 = arith.extf %0 : vector<128x128xbf16> to vector<128x128xf32>
    %c0_1 = arith.constant 0 : index
    %c0_2 = arith.constant 0 : index
    %2 = vector.load %arg2[%c0_1, %c0_2] : memref<1x128xf32, #tpu.memory_space<vmem>>, vector<1x128xf32>
    %3 = vector.broadcast %2 : vector<1x128xf32> to vector<128x128xf32>
    %4 = arith.mulf %1, %3 : vector<128x128xf32>
    %c0_3 = arith.constant 0 : index
    %c0_4 = arith.constant 0 : index
    %5 = vector.load %arg3[%c0_3, %c0_4] : memref<1x128xf32, #tpu.memory_space<vmem>>, vector<1x128xf32>
    %6 = vector.broadcast %5 : vector<1x128xf32> to vector<128x128xf32>
    %7 = arith.addf %4, %6 : vector<128x128xf32>
    %cst = arith.constant 0.000000e+00 : f32
    %8 = vector.broadcast %cst : f32 to vector<128x128xf32>
    %9 = arith.maximumf %7, %8 : vector<128x128xf32>
    %10 = arith.truncf %9 : vector<128x128xf32> to vector<128x128xbf16>
    %c0_5 = arith.constant 0 : index
    %c0_6 = arith.constant 0 : index
    %11 = vector.load %arg4[%c0_5, %c0_6] : memref<128x128xbf16, #tpu.memory_space<vmem>>, vector<128x128xbf16>
    tpu.vector_store %arg4[%c0_5, %c0_6], %10 {strides = array<i32>} : memref<128x128xbf16, #tpu.memory_space<vmem>>, vector<128x128xbf16>,
    return
  }
  func.func @transform_0(%arg0: i32) -> (i32, i32) {
    %c0_i32 = arith.constant 0 : i32
    %c0_i32_0 = arith.constant 0 : i32
    return %arg0, %c0_i32 : i32, i32
  }
  func.func @transform_1(%arg0: i32) -> (i32, i32) {
    %c0_i32 = arith.constant 0 : i32
    %c0_i32_0 = arith.constant 0 : i32
    %c0_i32_1 = arith.constant 0 : i32
    return %c0_i32, %c0_i32_0 : i32, i32
  }
  func.func @transform_2(%arg0: i32) -> (i32, i32) {
    %c0_i32 = arith.constant 0 : i32
    %c0_i32_0 = arith.constant 0 : i32
    %c0_i32_1 = arith.constant 0 : i32
    return %c0_i32, %c0_i32_0 : i32, i32
  }
  func.func @transform_3(%arg0: i32) -> (i32, i32) {
    %c0_i32 = arith.constant 0 : i32
    %c0_i32_0 = arith.constant 0 : i32
    return %arg0, %c0_i32 : i32, i32
  }
}

module attributes {stable_mosaic.version = 11 : i64} {
  func.func @_conv_skipbn_kernel(%arg0: i32, %arg1: memref<128x128xbf16, #tpu.memory_space<vmem>>, %arg2: memref<128x128xbf16, #tpu.memory_space<vmem>>, %arg3: memref<1x128xf32, #tpu.memory_space<vmem>>, %arg4: memref<128x128xbf16, #tpu.memory_space<vmem>>, %arg5: memref<128x128xbf16, #tpu.memory_space<vmem>>, %arg6: memref<1x128xf32, #tpu.memory_space<vmem>>, %arg7: memref<1x128xf32, #tpu.memory_space<vmem>>, %arg8: memref<128x128xf32, #tpu.memory_space<vmem>>) attributes {dimension_semantics = [#tpu.dimension_semantics<parallel>], iteration_bounds = array<i64: 1>, scalar_prefetch = 0 : i64, scratch_operands = 0 : i64, tpu.core_type = #tpu.core_type<tc>, window_params = [{transform_indices = @transform_0, window_bounds = array<i64: 128, 128>}, {pipeline_mode = #tpu.pipeline_mode<synchronous>, transform_indices = @transform_1, window_bounds = array<i64: 128, 128>}, {pipeline_mode = #tpu.pipeline_mode<synchronous>, transform_indices = @transform_2, window_bounds = array<i64: 1, 128>}, {transform_indices = @transform_3, window_bounds = array<i64: 128, 128>}, {pipeline_mode = #tpu.pipeline_mode<synchronous>, transform_indices = @transform_4, window_bounds = array<i64: 128, 128>}, {pipeline_mode = #tpu.pipeline_mode<synchronous>, transform_indices = @transform_5, window_bounds = array<i64: 1, 128>}, {pipeline_mode = #tpu.pipeline_mode<synchronous>, transform_indices = @transform_6, window_bounds = array<i64: 1, 128>}, {transform_indices = @transform_7, window_bounds = array<i64: 128, 128>}]} {
    %c0 = arith.constant 0 : index
    %c0_0 = arith.constant 0 : index
    %0 = vector.load %arg1[%c0, %c0_0] : memref<128x128xbf16, #tpu.memory_space<vmem>>, vector<128x128xbf16>
    %c0_1 = arith.constant 0 : index
    %c0_2 = arith.constant 0 : index
    %1 = vector.load %arg2[%c0_1, %c0_2] : memref<128x128xbf16, #tpu.memory_space<vmem>>, vector<128x128xbf16>
    %cst = arith.constant dense<0.000000e+00> : vector<128x128xf32>
    %2 = tpu.matmul %0, %1, %cst {dimension_numbers = #tpu.dot_dimension_numbers<[1], [0], [0], [1], [0, 0, 1, 1], [], []>} : vector<128x128xbf16>, vector<128x128xbf16>, vector<128x128xf32> -> vector<128x128xf32>
    %c0_3 = arith.constant 0 : index
    %c0_4 = arith.constant 0 : index
    %3 = vector.load %arg4[%c0_3, %c0_4] : memref<128x128xbf16, #tpu.memory_space<vmem>>, vector<128x128xbf16>
    %c0_5 = arith.constant 0 : index
    %c0_6 = arith.constant 0 : index
    %4 = vector.load %arg5[%c0_5, %c0_6] : memref<128x128xbf16, #tpu.memory_space<vmem>>, vector<128x128xbf16>
    %cst_7 = arith.constant dense<0.000000e+00> : vector<128x128xf32>
    %5 = tpu.matmul %3, %4, %cst_7 {dimension_numbers = #tpu.dot_dimension_numbers<[1], [0], [0], [1], [0, 0, 1, 1], [], []>} : vector<128x128xbf16>, vector<128x128xbf16>, vector<128x128xf32> -> vector<128x128xf32>
    %c0_8 = arith.constant 0 : index
    %c0_9 = arith.constant 0 : index
    %6 = vector.load %arg3[%c0_8, %c0_9] : memref<1x128xf32, #tpu.memory_space<vmem>>, vector<1x128xf32>
    %7 = vector.broadcast %6 : vector<1x128xf32> to vector<128x128xf32>
    %8 = arith.addf %2, %7 : vector<128x128xf32>
    %c0_10 = arith.constant 0 : index
    %c0_11 = arith.constant 0 : index
    %9 = vector.load %arg6[%c0_10, %c0_11] : memref<1x128xf32, #tpu.memory_space<vmem>>, vector<1x128xf32>
    %10 = vector.broadcast %9 : vector<1x128xf32> to vector<128x128xf32>
    %11 = arith.mulf %5, %10 : vector<128x128xf32>
    %12 = arith.addf %8, %11 : vector<128x128xf32>
    %c0_12 = arith.constant 0 : index
    %c0_13 = arith.constant 0 : index
    %13 = vector.load %arg7[%c0_12, %c0_13] : memref<1x128xf32, #tpu.memory_space<vmem>>, vector<1x128xf32>
    %14 = vector.broadcast %13 : vector<1x128xf32> to vector<128x128xf32>
    %15 = arith.addf %12, %14 : vector<128x128xf32>
    %c0_14 = arith.constant 0 : index
    %c0_15 = arith.constant 0 : index
    %16 = vector.load %arg8[%c0_14, %c0_15] : memref<128x128xf32, #tpu.memory_space<vmem>>, vector<128x128xf32>
    tpu.vector_store %arg8[%c0_14, %c0_15], %15 {strides = array<i32>} : memref<128x128xf32, #tpu.memory_space<vmem>>, vector<128x128xf32>,
    return
  }
  func.func @transform_0(%arg0: i32) -> (i32, i32) {
    %c0_i32 = arith.constant 0 : i32
    %c0_i32_0 = arith.constant 0 : i32
    return %arg0, %c0_i32 : i32, i32
  }
  func.func @transform_1(%arg0: i32) -> (i32, i32) {
    %c0_i32 = arith.constant 0 : i32
    %c0_i32_0 = arith.constant 0 : i32
    %c0_i32_1 = arith.constant 0 : i32
    return %c0_i32, %c0_i32_0 : i32, i32
  }
  func.func @transform_2(%arg0: i32) -> (i32, i32) {
    %c0_i32 = arith.constant 0 : i32
    %c0_i32_0 = arith.constant 0 : i32
    %c0_i32_1 = arith.constant 0 : i32
    return %c0_i32, %c0_i32_0 : i32, i32
  }
  func.func @transform_3(%arg0: i32) -> (i32, i32) {
    %c0_i32 = arith.constant 0 : i32
    %c0_i32_0 = arith.constant 0 : i32
    return %arg0, %c0_i32 : i32, i32
  }
  func.func @transform_4(%arg0: i32) -> (i32, i32) {
    %c0_i32 = arith.constant 0 : i32
    %c0_i32_0 = arith.constant 0 : i32
    %c0_i32_1 = arith.constant 0 : i32
    return %c0_i32, %c0_i32_0 : i32, i32
  }
  func.func @transform_5(%arg0: i32) -> (i32, i32) {
    %c0_i32 = arith.constant 0 : i32
    %c0_i32_0 = arith.constant 0 : i32
    %c0_i32_1 = arith.constant 0 : i32
    return %c0_i32, %c0_i32_0 : i32, i32
  }
  func.func @transform_6(%arg0: i32) -> (i32, i32) {
    %c0_i32 = arith.constant 0 : i32
    %c0_i32_0 = arith.constant 0 : i32
    %c0_i32_1 = arith.constant 0 : i32
    return %c0_i32, %c0_i32_0 : i32, i32
  }
  func.func @transform_7(%arg0: i32) -> (i32, i32) {
    %c0_i32 = arith.constant 0 : i32
    %c0_i32_0 = arith.constant 0 : i32
    return %arg0, %c0_i32 : i32, i32
  }
}

</mosaic_0001>

<bundles_post_ra>
// kernel: tile.13
= control target key start
LH: loop header
LB: loop body
LE: loop exit
PB: predicated region body
PF: predicated region fallthrough
CT: control target
= control target key end

     0   :  { %s28_s0 = inlined_call_operand.vmem [shape: f32[4], index: 0, kind: input, shape index: {}]   ;;  %s29_s1 = inlined_call_operand.vmem [shape: f32[16,4], index: 1, kind: output, shape index: {}]  }
   0x1   :  { %v4_v0 = vld [vmem:[%s28_s0] ss:$0 sm:$0xff] }
   0x2   :  { %5 = vst [vmem:[%s29_s1] sm:$0xff] %v4_v0  ;;  %8 = vst [vmem:[%s29_s1 + $0x8] sm:$0xff] %v4_v0 }

// kernel: tile.14
= control target key start
LH: loop header
LB: loop body
LE: loop exit
PB: predicated region body
PF: predicated region fallthrough
CT: control target
= control target key end

     0   :  { %s131_s10 = smov 60   ;;  %s132_s11 = smov 52   ;;  %vm3_vm0 = vcmask 31744   ;;  %vm9_vm1 = vcmask 523744   ;;  %vm15_vm2 = vcmask 490944   ;;  %vm21_vm3 = vcmask 458144   ;;  %s207_s0 = inlined_call_operand.vmem [shape: f32[16,4], index: 0, kind: input, shape index: {}]   ;;  %s208_s1 = inlined_call_operand.vmem [shape: f32[1,64], index: 1, kind: output, shape index: {}]  }
   0x1   :  { %v101_v0 = vld [vmem:[%s207_s0 + $0xf] sm:$0x1]   ;;  %v103_v1 = vld [vmem:[%s207_s0 + $0xd] sm:$0x1]   ;;  %v102_v2 = vld [vmem:[%s207_s0 + $0xe] sm:$0x1]  }
   0x2   :  { %7 = vrot.lane.b32.xlu0 %v101_v0, %s131_s10  ;;  %19 = vrot.lane.b32.xlu1 %v103_v1, %s132_s11  ;;  %v104_v3 = vld [vmem:[%s207_s0 + $0xc] sm:$0x1]   ;;  %s133_s16 = smov 56   ;;  %s134_s17 = smov 48   ;;  %v105_v4 = vld [vmem:[%s207_s0 + $0xb] sm:$0x1]  }
   0x3   :  { %v106_v5 = vld [vmem:[%s207_s0 + $0xa] sm:$0x1]   ;;  %v2_v6 = vld [vmem:[%s207_s0] sm:$0x1]   ;;  %s135_s24 = smov 44   ;;  %s136_s25 = smov 40  }
   0x4   :  { %4 = vst.msk [vmem:[#allocation0] sm:$0x1] %vm3_vm0, %v2_v6   ;;  %v107_v7 = vld [vmem:[%s207_s0 + $0x9] sm:$0x1]   ;;  %v108_v8 = vld [vmem:[%s207_s0 + $0x8] sm:$0x1]  }
   0x5   :  { %s137_s30 = smov 36   ;;  %s138_s2 = smov 32   ;;  %v109_v9 = vld [vmem:[%s207_s0 + $0x7] sm:$0x1]   ;;  %v110_v10 = vld [vmem:[%s207_s0 + $0x6] sm:$0x1]  }
   0x6   :  { %13 = vrot.lane.b32.xlu0 %v102_v2, %s133_s16  ;;  %25 = vrot.lane.b32.xlu1 %v104_v3, %s134_s17  ;;  %s139_s7 = smov 28   ;;  %s140_s8 = smov 24   ;;  %v111_v11 = vld [vmem:[%s207_s0 + $0x5] sm:$0x1]   ;;  %v112_v12 = vld [vmem:[%s207_s0 + $0x4] sm:$0x1]  }
   0x7   :  { %s141_s13 = smov 20   ;;  %s142_s14 = smov 16   ;;  %v113_v13 = vld [vmem:[%s207_s0 + $0x3] sm:$0x1]   ;;  %v114_v14 = vld [vmem:[%s207_s0 + $0x2] sm:$0x1]  }
   0x8   :  { %s143_s19 = smov 12   ;;  %s144_s20 = smov 8   ;;  %v115_v15 = vld [vmem:[%s207_s0 + $0x1] sm:$0x1]   ;;  %vm27_vm4 = vcmask 425344   ;;  %vm33_vm5 = vcmask 392544  }
   0x9   :  { %s145_s0 = smov 4   ;;  %vm39_vm6 = vcmask 359744   ;;  %vm45_vm7 = vcmask 326944   ;;  %vm51_vm8 = vcmask 294144   ;;  %vm57_vm9 = vcmask 261344  }
   0xa   :  { %31 = vrot.lane.b32.xlu0 %v105_v4, %s135_s24  ;;  %37 = vrot.lane.b32.xlu1 %v106_v5, %s136_s25  ;;  %vm63_vm10 = vcmask 228544   ;;  %vm69_vm11 = vcmask 195744   ;;  %vm75_vm12 = vcmask 162944   ;;  %vm81_vm13 = vcmask 130144  }
   0xb   :  { %vm87_vm14 = vcmask 97344   ;;  %vm93_vm15 = vcmask 64544  }
   0xe   :  { %43 = vrot.lane.b32.xlu0 %v107_v7, %s137_s30  ;;  %49 = vrot.lane.b32.xlu1 %v108_v8, %s138_s2 }
  0x12   :  { %55 = vrot.lane.b32.xlu0 %v109_v9, %s139_s7  ;;  %61 = vrot.lane.b32.xlu1 %v110_v10, %s140_s8 }
  0x16   :  { %67 = vrot.lane.b32.xlu0 %v111_v11, %s141_s13  ;;  %73 = vrot.lane.b32.xlu1 %v112_v12, %s142_s14 }
  0x1a   :  { %79 = vrot.lane.b32.xlu0 %v113_v13, %s143_s19  ;;  %85 = vrot.lane.b32.xlu1 %v114_v14, %s144_s20 }
  0x1e   :  { %91 = vrot.lane.b32.xlu0 %v115_v15, %s145_s0 }
  0x74   :  { %v8_v16 = vpop.permute.xlu0 %7   ;;  %v20_v17 = vpop.permute.xlu1 %19  }
  0x75   :  { %10 = vst.msk [vmem:[#allocation0] sm:$0x1] %vm9_vm1, %v8_v16  }
  0x78   :  { %v14_v18 = vpop.permute.xlu0 %13   ;;  %v26_v19 = vpop.permute.xlu1 %25  }
  0x79   :  { %16 = vst.msk [vmem:[#allocation0] sm:$0x1] %vm15_vm2, %v14_v18  }
  0x7a   :  { %22 = vst.msk [vmem:[#allocation0] sm:$0x1] %vm21_vm3, %v20_v17  }
  0x7b   :  { %28 = vst.msk [vmem:[#allocation0] sm:$0x1] %vm27_vm4, %v26_v19  }
  0x7c   :  { %v32_v20 = vpop.permute.xlu0 %31   ;;  %v38_v21 = vpop.permute.xlu1 %37  }
  0x7d   :  { %34 = vst.msk [vmem:[#allocation0] sm:$0x1] %vm33_vm5, %v32_v20  }
  0x7e   :  { %40 = vst.msk [vmem:[#allocation0] sm:$0x1] %vm39_vm6, %v38_v21  }
  0x80   :  { %v44_v22 = vpop.permute.xlu0 %43   ;;  %v50_v23 = vpop.permute.xlu1 %49  }
  0x81   :  { %46 = vst.msk [vmem:[#allocation0] sm:$0x1] %vm45_vm7, %v44_v22  }
  0x82   :  { %52 = vst.msk [vmem:[#allocation0] sm:$0x1] %vm51_vm8, %v50_v23  }
  0x84   :  { %v56_v24 = vpop.permute.xlu0 %55   ;;  %v62_v25 = vpop.permute.xlu1 %61  }
  0x85   :  { %58 = vst.msk [vmem:[#allocation0] sm:$0x1] %vm57_vm9, %v56_v24  }
  0x86   :  { %64 = vst.msk [vmem:[#allocation0] sm:$0x1] %vm63_vm10, %v62_v25  }
  0x88   :  { %v68_v26 = vpop.permute.xlu0 %67   ;;  %v74_v27 = vpop.permute.xlu1 %73  }
  0x89   :  { %70 = vst.msk [vmem:[#allocation0] sm:$0x1] %vm69_vm11, %v68_v26  }
  0x8a   :  { %76 = vst.msk [vmem:[#allocation0] sm:$0x1] %vm75_vm12, %v74_v27  }
  0x8c   :  { %v80_v28 = vpop.permute.xlu0 %79   ;;  %v86_v29 = vpop.permute.xlu1 %85  }
  0x8d   :  { %82 = vst.msk [vmem:[#allocation0] sm:$0x1] %vm81_vm13, %v80_v28  }
  0x8e   :  { %88 = vst.msk [vmem:[#allocation0] sm:$0x1] %vm87_vm14, %v86_v29  }
  0x90   :  { %v92_v30 = vpop.permute.xlu0 %91  }
  0x91   :  { %94 = vst.msk [vmem:[#allocation0] sm:$0x1] %vm93_vm15, %v92_v30  }
  0x98   :  { %v98_v31 = vld [vmem:[#allocation0] sm:$0x1] }
  0x99   :  { %100 = vst [vmem:[%s208_s1] sm:$0x1] %v98_v31 }

// kernel: resblock_forward.5
= control target key start
LH: loop header
LB: loop body
LE: loop exit
PB: predicated region body
PF: predicated region fallthrough
CT: control target
= control target key end

     0   :  { %vm14_vm0 = vcmask 516096   ;;  %vm22_vm1 = vcmask 523264   ;;  %v68_v0 = vmov 0.0   ;;  %s126_s0 = inlined_call_operand.vmem [shape: f32[32,64], index: 0, kind: input, shape index: {}]   ;;  %s127_s1 = inlined_call_operand.vmem [shape: f32[1,64], index: 1, kind: output, shape index: {0}]   ;;  %s128_s2 = inlined_call_operand.vmem [shape: f32[1,64], index: 2, kind: output, shape index: {1}]  }
   0x1   :  { %15 = vst.msk [vmem:[%s127_s1] sm:$0x1] %vm14_vm0, %v68_v0  ;;  %v17_v1 = vld [vmem:[%s126_s0] sm:$0xff]  ;;  %v18_v2 = vld [vmem:[%s126_s0 + $0x8] sm:$0xff]  ;;  %v19_v3 = vld [vmem:[%s126_s0 + $0x10] sm:$0xff] }
   0x2   :  { %16 = vst.msk [vmem:[%s128_s2] sm:$0x1] %vm14_vm0, %v68_v0  ;;  %v20_v4 = vld [vmem:[%s126_s0 + $0x18] sm:$0xff]  ;;  %v23_v5 = vsel %vm22_vm1, %v17_v1, 0.0  ;;  %v24_v6 = vsel %vm22_vm1, %v18_v2, 0.0  ;;  %v26_v7 = vsel %vm22_vm1, %v19_v3, 0.0  ;;  %v40_v8 = vmul.f32 %v17_v1, %v17_v1 }
   0x3   :  { %v25_v9 = vadd.f32 %v24_v6, %v23_v5  ;;  %v41_v10 = vmul.f32 %v18_v2, %v18_v2  ;;  %v42_v11 = vmul.f32 %v19_v3, %v19_v3  ;;  %v28_v12 = vsel %vm22_vm1, %v20_v4, 0.0 }
   0x4   :  { %v43_v13 = vmul.f32 %v20_v4, %v20_v4  ;;  %v44_v14 = vsel %vm22_vm1, %v40_v8, 0.0 }
   0x5   :  { %v27_v15 = vadd.f32 %v26_v7, %v25_v9  ;;  %v45_v16 = vsel %vm22_vm1, %v41_v10, 0.0  ;;  %v47_v17 = vsel %vm22_vm1, %v42_v11, 0.0 }
   0x6   :  { %v46_v18 = vadd.f32 %v45_v16, %v44_v14  ;;  %v49_v20 = vsel %vm22_vm1, %v43_v13, 0.0 }
   0x7   :  { %v29_v19 = vadd.f32 %v28_v12, %v27_v15 }
   0x8   :  { %v48_v21 = vadd.f32 %v47_v17, %v46_v18  ;;  %v21_v31 = vld [vmem:[%s127_s1] sm:$0x1] }
   0x9   :  { %v30_v22 = vrot.slane %v29_v19, 4  ;;  %v39_v36 = vld [vmem:[%s128_s2] sm:$0x1] }
   0xa   :  { %v50_v23 = vadd.f32 %v49_v20, %v48_v21 }
   0xb   :  { %v31_v24 = vadd.f32 %v30_v22, %v29_v19 }
   0xc   :  { %v51_v25 = vrot.slane %v50_v23, 4 }
   0xd   :  { %v32_v26 = vrot.slane %v31_v24, 2 }
   0xe   :  { %v52_v27 = vadd.f32 %v51_v25, %v50_v23 }
   0xf   :  { %v33_v28 = vadd.f32 %v32_v26, %v31_v24 }
  0x10   :  { %v53_v29 = vrot.slane %v52_v27, 2 }
  0x11   :  { %v34_v30 = vrot.slane %v33_v28, 1 }
  0x12   :  { %v54_v32 = vadd.f32 %v53_v29, %v52_v27 }
  0x13   :  { %v35_v33 = vadd.f32 %v34_v30, %v33_v28 }
  0x14   :  { %v55_v34 = vrot.slane %v54_v32, 1 }
  0x15   :  { %v36_v35 = vadd.f32 %v35_v33, %v21_v31 }
  0x16   :  { %v56_v37 = vadd.f32 %v55_v34, %v54_v32 }
  0x17   :  { %38 = vst.msk [vmem:[%s127_s1] sm:$0x1] %vm14_vm0, %v36_v35 }
  0x18   :  { %v57_v38 = vadd.f32 %v56_v37, %v39_v36 }
  0x1a   :  { %58 = vst.msk [vmem:[%s128_s2] sm:$0x1] %vm14_vm0, %v57_v38 }

// kernel: resblock_forward.6
= control target key start
LH: loop header
LB: loop body
LE: loop exit
PB: predicated region body
PF: predicated region fallthrough
CT: control target
= control target key end

     0   :  { %vm60_vm0 = vcmask 519168   ;;  %s129_s0 = inlined_call_operand.vmem [shape: f32[32,64], index: 0, kind: input, shape index: {}]   ;;  %s130_s1 = inlined_call_operand.vmem [shape: f32[1,64], index: 1, kind: input, shape index: {}]   ;;  %s131_s2 = inlined_call_operand.vmem [shape: f32[1,64], index: 2, kind: input, shape index: {}]   ;;  %s132_s3 = inlined_call_operand.vmem [shape: bf16[32,64], index: 3, kind: output, shape index: {}]  }
   0x1   :  { %v14_v0 = vld [vmem:[%s129_s0] sm:$0xff]  ;;  %v15_v4 = vld [vmem:[%s129_s0 + $0x8] sm:$0xff]  ;;  %v16_v5 = vld [vmem:[%s129_s0 + $0x10] sm:$0xff] }
   0x2   :  { %v69_v1 = vld [vmem:[%s130_s1] ss:$0 sm:$0xff]  ;;  %v17_v6 = vld [vmem:[%s129_s0 + $0x18] sm:$0xff] }
   0x3   :  { %v70_v2 = vld [vmem:[%s131_s2] ss:$0 sm:$0xff]  ;;  %v25_v3 = vmul.f32 %v69_v1, %v14_v0  ;;  %v26_v7 = vmul.f32 %v69_v1, %v15_v4  ;;  %v27_v8 = vmul.f32 %v69_v1, %v16_v5  ;;  %v28_v9 = vmul.f32 %v69_v1, %v17_v6 }
   0x5   :  { %v36_v10 = vadd.f32 %v70_v2, %v25_v3  ;;  %v37_v11 = vadd.f32 %v70_v2, %v26_v7  ;;  %v38_v12 = vadd.f32 %v70_v2, %v27_v8  ;;  %v39_v13 = vadd.f32 %v70_v2, %v28_v9 }
   0x7   :  { %v40_v14 = vmax.f32 %v36_v10, 0.0  ;;  %v41_v15 = vmax.f32 %v37_v11, 0.0  ;;  %v42_v16 = vmax.f32 %v38_v12, 0.0  ;;  %v43_v17 = vmax.f32 %v39_v13, 0.0 }
   0x9   :  { %v75_v18 = vpack.c.bf16 %v40_v14, %v40_v14  ;;  %v76_v19 = vpack.c.bf16 %v41_v15, %v41_v15  ;;  %v77_v20 = vpack.c.bf16 %v42_v16, %v42_v16  ;;  %v78_v21 = vpack.c.bf16 %v43_v17, %v43_v17 }
   0xb   :  { %61 = vst.msk [vmem:[%s132_s3] sm:$0xf] %vm60_vm0, %v75_v18  ;;  %62 = vst.msk [vmem:[%s132_s3 + $0x4] sm:$0xf] %vm60_vm0, %v76_v19 }
   0xc   :  { %63 = vst.msk [vmem:[%s132_s3 + $0x8] sm:$0xf] %vm60_vm0, %v77_v20  ;;  %64 = vst.msk [vmem:[%s132_s3 + $0xc] sm:$0xf] %vm60_vm0, %v78_v21 }

// kernel: resblock_forward.8
= control target key start
LH: loop header
LB: loop body
LE: loop exit
PB: predicated region body
PF: predicated region fallthrough
CT: control target
= control target key end

     0   :  { %s422_s0 = inlined_call_operand.vmem [shape: bf16[128,128], index: 0, kind: input, shape index: {}]   ;;  %s423_s1 = inlined_call_operand.vmem [shape: f32[1,128], index: 1, kind: input, shape index: {}]   ;;  %s424_s2 = inlined_call_operand.vmem [shape: f32[1,128], index: 2, kind: input, shape index: {}]   ;;  %s425_s3 = inlined_call_operand.vmem [shape: bf16[128,128], index: 3, kind: output, shape index: {}]  }
   0x1   :  { %v227_v0 = vld [vmem:[%s422_s0] sm:$0xff]   ;;  %v298_v4 = vld [vmem:[%s422_s0 + $0x8] sm:$0xff]   ;;  %v299_v5 = vld [vmem:[%s422_s0 + $0x10] sm:$0xff]  }
   0x2   :  { %v338_v1 = vld [vmem:[%s423_s1] ss:$0 sm:$0xff]  ;;  %v228_v2 = vunpack.c.l.bf16 %v227_v0  ;;  %v229_v3 = vunpack.c.h.bf16 %v227_v0  ;;  %v300_v6 = vld [vmem:[%s422_s0 + $0x18] sm:$0xff]   ;;  %v232_v8 = vunpack.c.l.bf16 %v298_v4  ;;  %v233_v9 = vunpack.c.h.bf16 %v298_v4  ;;  %v302_v33 = vld [vmem:[%s422_s0 + $0x28] sm:$0xff]  }
   0x3   :  { %v352_v7 = vld [vmem:[%s424_s2] ss:$0 sm:$0xff]  ;;  %v236_v10 = vunpack.c.l.bf16 %v299_v5  ;;  %v237_v11 = vunpack.c.h.bf16 %v299_v5  ;;  %v240_v14 = vunpack.c.l.bf16 %v300_v6  ;;  %v241_v15 = vunpack.c.h.bf16 %v300_v6  ;;  %v303_v38 = vld [vmem:[%s422_s0 + $0x30] sm:$0xff]   ;;  %v304_v43 = vld [vmem:[%s422_s0 + $0x38] sm:$0xff]  }
   0x4   :  { %v53_v12 = vmul.f32 %v228_v2, %v338_v1  ;;  %v54_v13 = vmul.f32 %v229_v3, %v338_v1  ;;  %v55_v16 = vmul.f32 %v232_v8, %v338_v1  ;;  %v56_v17 = vmul.f32 %v233_v9, %v338_v1  ;;  %v301_v28 = vld [vmem:[%s422_s0 + $0x20] sm:$0xff]  }
   0x5   :  { %v57_v18 = vmul.f32 %v236_v10, %v338_v1  ;;  %v58_v19 = vmul.f32 %v237_v11, %v338_v1  ;;  %v59_v22 = vmul.f32 %v240_v14, %v338_v1  ;;  %v60_v23 = vmul.f32 %v241_v15, %v338_v1 }
   0x6   :  { %v76_v20 = vadd.f32 %v352_v7, %v53_v12  ;;  %v77_v21 = vadd.f32 %v352_v7, %v54_v13  ;;  %v78_v24 = vadd.f32 %v352_v7, %v55_v16  ;;  %v79_v25 = vadd.f32 %v352_v7, %v56_v17 }
   0x7   :  { %v80_v26 = vadd.f32 %v352_v7, %v57_v18  ;;  %v81_v27 = vadd.f32 %v352_v7, %v58_v19  ;;  %v82_v31 = vadd.f32 %v352_v7, %v59_v22  ;;  %v83_v32 = vadd.f32 %v352_v7, %v60_v23 }
   0x8   :  { %v92_v29 = vmax.f32 %v76_v20, 0.0  ;;  %v93_v30 = vmax.f32 %v77_v21, 0.0  ;;  %v94_v34 = vmax.f32 %v78_v24, 0.0  ;;  %v95_v35 = vmax.f32 %v79_v25, 0.0 }
   0x9   :  { %v96_v36 = vmax.f32 %v80_v26, 0.0  ;;  %v97_v37 = vmax.f32 %v81_v27, 0.0  ;;  %v98_v40 = vmax.f32 %v82_v31, 0.0  ;;  %v99_v41 = vmax.f32 %v83_v32, 0.0 }
   0xa   :  { %v261_v39 = vpack.c.bf16 %v93_v30, %v92_v29  ;;  %v244_v42 = vunpack.c.l.bf16 %v301_v28  ;;  %v266_v44 = vpack.c.bf16 %v95_v35, %v94_v34  ;;  %v245_v46 = vunpack.c.h.bf16 %v301_v28 }
   0xb   :  { %v271_v45 = vpack.c.bf16 %v97_v37, %v96_v36  ;;  %v248_v47 = vunpack.c.l.bf16 %v302_v33  ;;  %v276_v48 = vpack.c.bf16 %v99_v41, %v98_v40  ;;  %v249_v50 = vunpack.c.h.bf16 %v302_v33 }
   0xc   :  { %262 = vst [vmem:[%s425_s3] sm:$0xff] %v261_v39   ;;  %v61_v49 = vmul.f32 %v244_v42, %v338_v1  ;;  %v252_v51 = vunpack.c.l.bf16 %v303_v38  ;;  %305 = vst [vmem:[%s425_s3 + $0x8] sm:$0xff] %v266_v44   ;;  %v62_v52 = vmul.f32 %v245_v46, %v338_v1  ;;  %v253_v54 = vunpack.c.h.bf16 %v303_v38 }
   0xd   :  { %306 = vst [vmem:[%s425_s3 + $0x10] sm:$0xff] %v271_v45   ;;  %v63_v53 = vmul.f32 %v248_v47, %v338_v1  ;;  %v256_v55 = vunpack.c.l.bf16 %v304_v43  ;;  %307 = vst [vmem:[%s425_s3 + $0x18] sm:$0xff] %v276_v48   ;;  %v64_v57 = vmul.f32 %v249_v50, %v338_v1  ;;  %v257_v59 = vunpack.c.h.bf16 %v304_v43 }
   0xe   :  { %v84_v56 = vadd.f32 %v352_v7, %v61_v49  ;;  %v65_v58 = vmul.f32 %v252_v51, %v338_v1  ;;  %v85_v60 = vadd.f32 %v352_v7, %v62_v52  ;;  %v66_v62 = vmul.f32 %v253_v54, %v338_v1 }
   0xf   :  { %v86_v61 = vadd.f32 %v352_v7, %v63_v53  ;;  %v67_v63 = vmul.f32 %v256_v55, %v338_v1  ;;  %v87_v2 = vadd.f32 %v352_v7, %v64_v57  ;;  %v68_v4 = vmul.f32 %v257_v59, %v338_v1 }
  0x10   :  { %v100_v0 = vmax.f32 %v84_v56, 0.0  ;;  %v88_v3 = vadd.f32 %v352_v7, %v65_v58  ;;  %v101_v5 = vmax.f32 %v85_v60, 0.0  ;;  %v89_v8 = vadd.f32 %v352_v7, %v66_v62 }
  0x11   :  { %v102_v6 = vmax.f32 %v86_v61, 0.0  ;;  %v90_v9 = vadd.f32 %v352_v7, %v67_v63  ;;  %v103_v10 = vmax.f32 %v87_v2, 0.0  ;;  %v91_v12 = vadd.f32 %v352_v7, %v68_v4 }
  0x12   :  { %v104_v11 = vmax.f32 %v88_v3, 0.0  ;;  %v281_v13 = vpack.c.bf16 %v101_v5, %v100_v0  ;;  %v105_v14 = vmax.f32 %v89_v8, 0.0 }
  0x13   :  { %v106_v15 = vmax.f32 %v90_v9, 0.0  ;;  %v286_v16 = vpack.c.bf16 %v103_v10, %v102_v6  ;;  %v107_v17 = vmax.f32 %v91_v12, 0.0 }
  0x14   :  { %308 = vst [vmem:[%s425_s3 + $0x20] sm:$0xff] %v281_v13   ;;  %v291_v1 = vpack.c.bf16 %v105_v14, %v104_v11 }
  0x15   :  { %309 = vst [vmem:[%s425_s3 + $0x28] sm:$0xff] %v286_v16   ;;  %v296_v18 = vpack.c.bf16 %v107_v17, %v106_v15 }
  0x16   :  { %310 = vst [vmem:[%s425_s3 + $0x30] sm:$0xff] %v291_v1  }
  0x17   :  { %311 = vst [vmem:[%s425_s3 + $0x38] sm:$0xff] %v296_v18  }

// kernel: resblock_forward.7
= control target key start
LH: loop header
LB: loop body
LE: loop exit
PB: predicated region body
PF: predicated region fallthrough
CT: control target
= control target key end

     0   :  { %v949_v32 = vmov 0.0   ;;  %s1151_s1 = inlined_call_operand.vmem [shape: bf16[128,128], index: 1, kind: input, shape index: {}]   ;;  %s1152_s3 = inlined_call_operand.vmem [shape: bf16[128,128], index: 3, kind: input, shape index: {}]   ;;  %s1153_s0 = inlined_call_operand.vmem [shape: bf16[128,128], index: 0, kind: input, shape index: {}]   ;;  %s1154_s2 = inlined_call_operand.vmem [shape: bf16[128,128], index: 2, kind: input, shape index: {}]   ;;  %s1155_s5 = inlined_call_operand.vmem [shape: f32[1,128], index: 5, kind: output, shape index: {1}]   ;;  %s1156_s6 = inlined_call_operand.vmem [shape: f32[1,128], index: 6, kind: output, shape index: {2}]   ;;  %s1157_s7 = inlined_call_operand.vmem [shape: f32[1,128], index: 7, kind: output, shape index: {3}]   ;;  %s1158_s8 = inlined_call_operand.vmem [shape: f32[1,128], index: 8, kind: output, shape index: {4}]   ;;  %s1159_s4 = inlined_call_operand.vmem [shape: bf16[128,128], index: 4, kind: output, shape index: {0}]  }
   0x1   :  { %v917_v0 = vld [vmem:[%s1151_s1] sm:$0xff]   ;;  %v919_v2 = vld [vmem:[%s1151_s1 + $0x8] sm:$0xff]   ;;  %v921_v4 = vld [vmem:[%s1151_s1 + $0x10] sm:$0xff]   ;;  %27 = vst [vmem:[%s1155_s5] sm:$0x1] %v949_v32 }
   0x2   :  { %v918_v1 = vld [vmem:[%s1152_s3] sm:$0xff]   ;;  %852 = vmatprep.subr.bf16.mxu0 %v917_v0  ;;  %v920_v3 = vld [vmem:[%s1152_s3 + $0x8] sm:$0xff]   ;;  %v922_v5 = vld [vmem:[%s1152_s3 + $0x10] sm:$0xff]   ;;  %28 = vst [vmem:[%s1156_s6] sm:$0x1] %v949_v32 }
   0x3   :  { %884 = vmatprep.subr.bf16.mxu1 %v918_v1  ;;  %853 = vmatpush3.bf16.msra.mxu0 %v917_v0  ;;  %v923_v6 = vld [vmem:[%s1151_s1 + $0x18] sm:$0xff]   ;;  %v925_v8 = vld [vmem:[%s1151_s1 + $0x20] sm:$0xff]   ;;  %v927_v10 = vld [vmem:[%s1151_s1 + $0x28] sm:$0xff]   ;;  %29 = vst [vmem:[%s1157_s7] sm:$0x1] %v949_v32 }
   0x4   :  { %885 = vmatpush3.bf16.msra.mxu1 %v918_v1  ;;  %854 = vmatprep.subr.bf16.mxu0 %v919_v2  ;;  %v924_v7 = vld [vmem:[%s1152_s3 + $0x18] sm:$0xff]   ;;  %v926_v9 = vld [vmem:[%s1152_s3 + $0x20] sm:$0xff]   ;;  %v928_v11 = vld [vmem:[%s1152_s3 + $0x28] sm:$0xff]   ;;  %30 = vst [vmem:[%s1158_s8] sm:$0x1] %v949_v32 }
   0x5   :  { %886 = vmatprep.subr.bf16.mxu1 %v920_v3  ;;  %v933_v12 = vld [vmem:[%s1153_s0] sm:$0xff]   ;;  %v929_v14 = vld [vmem:[%s1151_s1 + $0x30] sm:$0xff]   ;;  %v931_v16 = vld [vmem:[%s1151_s1 + $0x38] sm:$0xff]  }
   0x6   :  { %v934_v13 = vld [vmem:[%s1154_s2] sm:$0xff]   ;;  %868 = vmatprep.mubr.bf16.mxu0 %v933_v12  ;;  %v930_v15 = vld [vmem:[%s1152_s3 + $0x30] sm:$0xff]   ;;  %v932_v17 = vld [vmem:[%s1152_s3 + $0x38] sm:$0xff]  }
   0x7   :  { %855 = vmatpush3.bf16.msra.mxu0 %v919_v2  ;;  %900 = vmatprep.mubr.bf16.mxu1 %v934_v13  ;;  %v935_v18 = vld [vmem:[%s1153_s0 + $0x8] sm:$0xff]   ;;  %v937_v20 = vld [vmem:[%s1153_s0 + $0x10] sm:$0xff]   ;;  %v939_v22 = vld [vmem:[%s1153_s0 + $0x18] sm:$0xff]  }
   0x8   :  { %887 = vmatpush3.bf16.msra.mxu1 %v920_v3  ;;  %856 = vmatprep.subr.bf16.mxu0 %v921_v4  ;;  %v936_v19 = vld [vmem:[%s1154_s2 + $0x8] sm:$0xff]   ;;  %v938_v21 = vld [vmem:[%s1154_s2 + $0x10] sm:$0xff]   ;;  %v940_v23 = vld [vmem:[%s1154_s2 + $0x18] sm:$0xff]  }
   0x9   :  { %888 = vmatprep.subr.bf16.mxu1 %v922_v5  ;;  %v941_v24 = vld [vmem:[%s1153_s0 + $0x20] sm:$0xff]   ;;  %v943_v26 = vld [vmem:[%s1153_s0 + $0x28] sm:$0xff]   ;;  %v945_v28 = vld [vmem:[%s1153_s0 + $0x30] sm:$0xff]  }
   0xa   :  { %v942_v25 = vld [vmem:[%s1154_s2 + $0x20] sm:$0xff]   ;;  %v944_v27 = vld [vmem:[%s1154_s2 + $0x28] sm:$0xff]   ;;  %v946_v29 = vld [vmem:[%s1154_s2 + $0x30] sm:$0xff]  }
   0xb   :  { %857 = vmatpush3.bf16.msra.mxu0 %v921_v4  ;;  %v947_v30 = vld [vmem:[%s1153_s0 + $0x38] sm:$0xff]  }
   0xc   :  { %889 = vmatpush3.bf16.msra.mxu1 %v922_v5  ;;  %858 = vmatprep.subr.bf16.mxu0 %v923_v6  ;;  %v948_v31 = vld [vmem:[%s1154_s2 + $0x38] sm:$0xff]  }
   0xd   :  { %890 = vmatprep.subr.bf16.mxu1 %v924_v7 }
   0xf   :  { %859 = vmatpush3.bf16.msra.mxu0 %v923_v6 }
  0x10   :  { %891 = vmatpush3.bf16.msra.mxu1 %v924_v7  ;;  %860 = vmatprep.subr.bf16.mxu0 %v925_v8 }
  0x11   :  { %892 = vmatprep.subr.bf16.mxu1 %v926_v9 }
  0x13   :  { %861 = vmatpush3.bf16.msra.mxu0 %v925_v8 }
  0x14   :  { %893 = vmatpush3.bf16.msra.mxu1 %v926_v9  ;;  %862 = vmatprep.subr.bf16.mxu0 %v927_v10 }
  0x15   :  { %894 = vmatprep.subr.bf16.mxu1 %v928_v11 }
  0x17   :  { %863 = vmatpush3.bf16.msra.mxu0 %v927_v10 }
  0x18   :  { %895 = vmatpush3.bf16.msra.mxu1 %v928_v11  ;;  %864 = vmatprep.subr.bf16.mxu0 %v929_v14 }
  0x19   :  { %896 = vmatprep.subr.bf16.mxu1 %v930_v15 }
  0x1b   :  { %865 = vmatpush3.bf16.msra.mxu0 %v929_v14 }
  0x1c   :  { %897 = vmatpush3.bf16.msra.mxu1 %v930_v15  ;;  %866 = vmatprep.subr.bf16.mxu0 %v931_v16 }
  0x1d   :  { %898 = vmatprep.subr.bf16.mxu1 %v932_v17 }
  0x1f   :  { %867 = vmatpush3.bf16.msra.mxu0 %v931_v16 }
  0x20   :  { %899 = vmatpush3.bf16.msra.mxu1 %v932_v17 }
  0x22   :  { %869 = vmatmul.mubr.bf16.vlgmr.msra.gmra.mrb[0].mxu0 %v935_v18 }
  0x23   :  { %901 = vmatmul.mubr.bf16.vlgmr.msra.gmra.mrb[0].mxu1 %v936_v19  ;;  %872 = vmatprep.mubr.bf16.mxu0 %v937_v20 }
  0x24   :  { %904 = vmatprep.mubr.bf16.mxu1 %v938_v21 }
  0x2a   :  { %873 = vmatmul.mubr.bf16.gmra.mrb[4].mxu0 %v939_v22 }
  0x2b   :  { %905 = vmatmul.mubr.bf16.gmra.mrb[4].mxu1 %v940_v23  ;;  %876 = vmatprep.mubr.bf16.mxu0 %v941_v24 }
  0x2c   :  { %908 = vmatprep.mubr.bf16.mxu1 %v942_v25 }
  0x32   :  { %877 = vmatmul.mubr.bf16.gmra.mrb[8].mxu0 %v943_v26 }
  0x33   :  { %909 = vmatmul.mubr.bf16.gmra.mrb[8].mxu1 %v944_v27  ;;  %880 = vmatprep.mubr.bf16.mxu0 %v945_v28 }
  0x34   :  { %912 = vmatprep.mubr.bf16.mxu1 %v946_v29 }
  0x3a   :  { %881 = vmatmul.mubr.bf16.gmra.mrb[12].mxu0 %v947_v30 }
  0x3b   :  { %913 = vmatmul.mubr.bf16.gmra.mrb[12].mxu1 %v948_v31 }
  0xf5   :  { %v870_v33 = vpop.f32.mrb[0].mxu0 }
  0xf6   :  { %v902_v34 = vpop.f32.mrb[0].mxu1  ;;  %v193_v35 = vpop.f32.mrb[1].mxu0  ;;  %v363_v49 = vmul.f32 %v870_v33, %v870_v33 }
  0xf7   :  { %v562_v36 = vpop.f32.mrb[1].mxu1  ;;  %v871_v37 = vpop.f32.mrb[2].mxu0  ;;  %v361_v41 = vmul.f32 %v193_v35, %v193_v35  ;;  %v652_v52 = vmul.f32 %v902_v34, %v902_v34 }
  0xf8   :  { %v781_v38 = vpack.c.bf16 %v871_v37, %v870_v33  ;;  %v903_v39 = vpop.f32.mrb[2].mxu1  ;;  %v196_v40 = vpop.f32.mrb[3].mxu0  ;;  %v650_v46 = vmul.f32 %v562_v36, %v562_v36  ;;  %v364_v55 = vmul.f32 %v871_v37, %v871_v37 }
  0xf9   :  { %v776_v42 = vpack.c.bf16 %v196_v40, %v193_v35  ;;  %v337_v43 = vadd.f32 %v196_v40, %v193_v35  ;;  %v362_v44 = vmul.f32 %v196_v40, %v196_v40  ;;  %v565_v45 = vpop.f32.mrb[3].mxu1  ;;  %v653_v59 = vmul.f32 %v903_v39, %v903_v39 }
  0xfa   :  { %813 = vst [vmem:[%s1159_s4 + $0x8] sm:$0xff] %v781_v38   ;;  %v626_v47 = vadd.f32 %v565_v45, %v562_v36  ;;  %v651_v48 = vmul.f32 %v565_v45, %v565_v45 }
  0xfb   :  { %777 = vst [vmem:[%s1159_s4] sm:$0xff] %v776_v42   ;;  %v338_v50 = vadd.f32 %v870_v33, %v337_v43  ;;  %v377_v51 = vadd.f32 %v362_v44, %v361_v41 }
  0xfc   :  { %v627_v53 = vadd.f32 %v902_v34, %v626_v47  ;;  %v666_v54 = vadd.f32 %v651_v48, %v650_v46 }
  0xfd   :  { %v378_v56 = vadd.f32 %v377_v51, %v363_v49  ;;  %v874_v57 = vpop.f32.mrb[4].mxu0  ;;  %v339_v58 = vadd.f32 %v871_v37, %v338_v50 }
  0xfe   :  { %v667_v60 = vadd.f32 %v666_v54, %v652_v52  ;;  %v906_v61 = vpop.f32.mrb[4].mxu1  ;;  %v209_v62 = vpop.f32.mrb[5].mxu0  ;;  %v628_v63 = vadd.f32 %v903_v39, %v627_v53  ;;  %v367_v19 = vmul.f32 %v874_v57, %v874_v57 }
  0xff   :  { %v340_v0 = vadd.f32 %v339_v58, %v209_v62  ;;  %v365_v1 = vmul.f32 %v209_v62, %v209_v62  ;;  %v379_v2 = vadd.f32 %v378_v56, %v364_v55  ;;  %v578_v3 = vpop.f32.mrb[5].mxu1  ;;  %v875_v4 = vpop.f32.mrb[6].mxu0  ;;  %v656_v23 = vmul.f32 %v906_v61, %v906_v61 }
 0x100   :  { %v629_v5 = vadd.f32 %v628_v63, %v578_v3  ;;  %v654_v6 = vmul.f32 %v578_v3, %v578_v3  ;;  %v668_v7 = vadd.f32 %v667_v60, %v653_v59  ;;  %v791_v8 = vpack.c.bf16 %v875_v4, %v874_v57  ;;  %v907_v9 = vpop.f32.mrb[6].mxu1  ;;  %v212_v10 = vpop.f32.mrb[7].mxu0 }
 0x101   :  { %v380_v11 = vadd.f32 %v379_v2, %v365_v1  ;;  %v786_v12 = vpack.c.bf16 %v212_v10, %v209_v62  ;;  %v581_v13 = vpop.f32.mrb[7].mxu1  ;;  %v341_v15 = vadd.f32 %v340_v0, %v212_v10  ;;  %v366_v16 = vmul.f32 %v212_v10, %v212_v10 }
 0x102   :  { %v669_v14 = vadd.f32 %v668_v7, %v654_v6  ;;  %815 = vst [vmem:[%s1159_s4 + $0x18] sm:$0xff] %v791_v8   ;;  %v630_v17 = vadd.f32 %v629_v5, %v581_v13  ;;  %v655_v18 = vmul.f32 %v581_v13, %v581_v13  ;;  %v368_v26 = vmul.f32 %v875_v4, %v875_v4 }
 0x103   :  { %814 = vst [vmem:[%s1159_s4 + $0x10] sm:$0xff] %v786_v12   ;;  %v342_v20 = vadd.f32 %v874_v57, %v341_v15  ;;  %v381_v21 = vadd.f32 %v380_v11, %v366_v16  ;;  %v657_v32 = vmul.f32 %v907_v9, %v907_v9 }
 0x104   :  { %v631_v22 = vadd.f32 %v906_v61, %v630_v17  ;;  %v670_v24 = vadd.f32 %v669_v14, %v655_v18 }
 0x105   :  { %v878_v25 = vpop.f32.mrb[8].mxu0  ;;  %v382_v27 = vadd.f32 %v381_v21, %v367_v19  ;;  %v343_v30 = vadd.f32 %v875_v4, %v342_v20 }
 0x106   :  { %v910_v28 = vpop.f32.mrb[8].mxu1  ;;  %v225_v29 = vpop.f32.mrb[9].mxu0  ;;  %v632_v31 = vadd.f32 %v907_v9, %v631_v22  ;;  %v671_v33 = vadd.f32 %v670_v24, %v656_v23  ;;  %v371_v53 = vmul.f32 %v878_v25, %v878_v25 }
 0x107   :  { %v369_v34 = vmul.f32 %v225_v29, %v225_v29  ;;  %v594_v35 = vpop.f32.mrb[9].mxu1  ;;  %v879_v36 = vpop.f32.mrb[10].mxu0  ;;  %v344_v37 = vadd.f32 %v343_v30, %v225_v29  ;;  %v383_v38 = vadd.f32 %v382_v27, %v368_v26  ;;  %v660_v56 = vmul.f32 %v910_v28, %v910_v28 }
 0x108   :  { %v633_v39 = vadd.f32 %v632_v31, %v594_v35  ;;  %v658_v40 = vmul.f32 %v594_v35, %v594_v35  ;;  %v911_v41 = vpop.f32.mrb[10].mxu1  ;;  %v228_v42 = vpop.f32.mrb[11].mxu0  ;;  %v672_v43 = vadd.f32 %v671_v33, %v657_v32  ;;  %v801_v44 = vpack.c.bf16 %v879_v36, %v878_v25 }
 0x109   :  { %v597_v45 = vpop.f32.mrb[11].mxu1  ;;  %v384_v46 = vadd.f32 %v383_v38, %v369_v34  ;;  %v796_v47 = vpack.c.bf16 %v228_v42, %v225_v29  ;;  %v345_v48 = vadd.f32 %v344_v37, %v228_v42  ;;  %v370_v49 = vmul.f32 %v228_v42, %v228_v42 }
 0x10a   :  { %v673_v50 = vadd.f32 %v672_v43, %v658_v40  ;;  %817 = vst [vmem:[%s1159_s4 + $0x28] sm:$0xff] %v801_v44   ;;  %v634_v51 = vadd.f32 %v633_v39, %v597_v45  ;;  %v659_v52 = vmul.f32 %v597_v45, %v597_v45  ;;  %v372_v60 = vmul.f32 %v879_v36, %v879_v36 }
 0x10b   :  { %816 = vst [vmem:[%s1159_s4 + $0x20] sm:$0xff] %v796_v47   ;;  %v346_v54 = vadd.f32 %v878_v25, %v345_v48  ;;  %v385_v55 = vadd.f32 %v384_v46, %v370_v49  ;;  %v661_v1 = vmul.f32 %v911_v41, %v911_v41 }
 0x10c   :  { %v635_v57 = vadd.f32 %v910_v28, %v634_v51  ;;  %v674_v58 = vadd.f32 %v673_v50, %v659_v52 }
 0x10d   :  { %v882_v59 = vpop.f32.mrb[12].mxu0  ;;  %v386_v61 = vadd.f32 %v385_v55, %v371_v53  ;;  %v347_v0 = vadd.f32 %v879_v36, %v346_v54  ;;  %v336_v53 = vld [vmem:[%s1155_s5] sm:$0x1] }
 0x10e   :  { %v914_v62 = vpop.f32.mrb[12].mxu1  ;;  %v241_v63 = vpop.f32.mrb[13].mxu0  ;;  %v675_v2 = vadd.f32 %v674_v58, %v660_v56  ;;  %v636_v5 = vadd.f32 %v911_v41, %v635_v57  ;;  %v375_v23 = vmul.f32 %v882_v59, %v882_v59  ;;  %v625_v58 = vld [vmem:[%s1157_s7] sm:$0x1] }
 0x10f   :  { %v373_v3 = vmul.f32 %v241_v63, %v241_v63  ;;  %v610_v4 = vpop.f32.mrb[13].mxu1  ;;  %v883_v6 = vpop.f32.mrb[14].mxu0  ;;  %v348_v7 = vadd.f32 %v347_v0, %v241_v63  ;;  %v387_v8 = vadd.f32 %v386_v61, %v372_v60  ;;  %v664_v26 = vmul.f32 %v914_v62, %v914_v62  ;;  %v649_v0 = vld [vmem:[%s1158_s8] sm:$0x1] }
 0x110   :  { %v662_v9 = vmul.f32 %v610_v4, %v610_v4  ;;  %v811_v10 = vpack.c.bf16 %v883_v6, %v882_v59  ;;  %v915_v11 = vpop.f32.mrb[14].mxu1  ;;  %v244_v12 = vpop.f32.mrb[15].mxu0  ;;  %v637_v13 = vadd.f32 %v636_v5, %v610_v4  ;;  %v676_v14 = vadd.f32 %v675_v2, %v661_v1 }
 0x111   :  { %v613_v15 = vpop.f32.mrb[15].mxu1  ;;  %v388_v16 = vadd.f32 %v387_v8, %v373_v3  ;;  %v806_v17 = vpack.c.bf16 %v244_v12, %v241_v63  ;;  %v349_v18 = vadd.f32 %v348_v7, %v244_v12  ;;  %v374_v19 = vmul.f32 %v244_v12, %v244_v12 }
 0x112   :  { %819 = vst [vmem:[%s1159_s4 + $0x38] sm:$0xff] %v811_v10   ;;  %v677_v20 = vadd.f32 %v676_v14, %v662_v9  ;;  %v638_v21 = vadd.f32 %v637_v13, %v613_v15  ;;  %v663_v22 = vmul.f32 %v613_v15, %v613_v15  ;;  %v376_v29 = vmul.f32 %v883_v6, %v883_v6 }
 0x113   :  { %818 = vst [vmem:[%s1159_s4 + $0x30] sm:$0xff] %v806_v17   ;;  %v350_v24 = vadd.f32 %v882_v59, %v349_v18  ;;  %v389_v25 = vadd.f32 %v388_v16, %v374_v19  ;;  %v665_v32 = vmul.f32 %v915_v11, %v915_v11  ;;  %v360_v59 = vld [vmem:[%s1156_s6] sm:$0x1] }
 0x114   :  { %v639_v27 = vadd.f32 %v914_v62, %v638_v21  ;;  %v678_v28 = vadd.f32 %v677_v20, %v663_v22 }
 0x115   :  { %v351_v30 = vadd.f32 %v883_v6, %v350_v24  ;;  %v390_v31 = vadd.f32 %v389_v25, %v375_v23 }
 0x116   :  { %v640_v33 = vadd.f32 %v915_v11, %v639_v27  ;;  %v679_v34 = vadd.f32 %v678_v28, %v664_v26 }
 0x117   :  { %v352_v35 = vrot.slane %v351_v30, 4  ;;  %v391_v36 = vadd.f32 %v390_v31, %v376_v29 }
 0x118   :  { %v641_v37 = vrot.slane %v640_v33, 4  ;;  %v680_v38 = vadd.f32 %v679_v34, %v665_v32 }
 0x119   :  { %v353_v39 = vadd.f32 %v352_v35, %v351_v30  ;;  %v392_v40 = vrot.slane %v391_v36, 4 }
 0x11a   :  { %v642_v41 = vadd.f32 %v641_v37, %v640_v33  ;;  %v681_v42 = vrot.slane %v680_v38, 4 }
 0x11b   :  { %v354_v43 = vrot.slane %v353_v39, 2  ;;  %v393_v44 = vadd.f32 %v392_v40, %v391_v36 }
 0x11c   :  { %v643_v45 = vrot.slane %v642_v41, 2  ;;  %v682_v46 = vadd.f32 %v681_v42, %v680_v38 }
 0x11d   :  { %v355_v47 = vadd.f32 %v354_v43, %v353_v39  ;;  %v394_v48 = vrot.slane %v393_v44, 2 }
 0x11e   :  { %v644_v49 = vadd.f32 %v643_v45, %v642_v41  ;;  %v683_v50 = vrot.slane %v682_v46, 2 }
 0x11f   :  { %v356_v51 = vrot.slane %v355_v47, 1  ;;  %v395_v52 = vadd.f32 %v394_v48, %v393_v44 }
 0x120   :  { %v645_v54 = vrot.slane %v644_v49, 1  ;;  %v684_v55 = vadd.f32 %v683_v50, %v682_v46 }
 0x121   :  { %v357_v56 = vadd.f32 %v356_v51, %v355_v47  ;;  %v396_v57 = vrot.slane %v395_v52, 1 }
 0x122   :  { %v646_v60 = vadd.f32 %v645_v54, %v644_v49  ;;  %v685_v61 = vrot.slane %v684_v55, 1 }
 0x123   :  { %v358_v62 = vadd.f32 %v357_v56, %v336_v53  ;;  %v397_v63 = vadd.f32 %v396_v57, %v395_v52 }
 0x124   :  { %v647_v1 = vadd.f32 %v646_v60, %v625_v58  ;;  %v686_v2 = vadd.f32 %v685_v61, %v684_v55 }
 0x125   :  { %359 = vst [vmem:[%s1155_s5] sm:$0x1] %v358_v62  ;;  %v398_v3 = vadd.f32 %v397_v63, %v360_v59 }
 0x126   :  { %648 = vst [vmem:[%s1157_s7] sm:$0x1] %v647_v1  ;;  %v687_v4 = vadd.f32 %v686_v2, %v649_v0 }
 0x127   :  { %399 = vst [vmem:[%s1156_s6] sm:$0x1] %v398_v3 }
 0x128   :  { %688 = vst [vmem:[%s1158_s8] sm:$0x1] %v687_v4 }

// kernel: resblock_forward.9
= control target key start
LH: loop header
LB: loop body
LE: loop exit
PB: predicated region body
PF: predicated region fallthrough
CT: control target
= control target key end

     0   :  { %s976_s4 = inlined_call_operand.vmem [shape: bf16[128,128], index: 4, kind: input, shape index: {}]   ;;  %s977_s1 = inlined_call_operand.vmem [shape: bf16[128,128], index: 1, kind: input, shape index: {}]   ;;  %s978_s3 = inlined_call_operand.vmem [shape: bf16[128,128], index: 3, kind: input, shape index: {}]   ;;  %s979_s0 = inlined_call_operand.vmem [shape: bf16[128,128], index: 0, kind: input, shape index: {}]   ;;  %s980_s5 = inlined_call_operand.vmem [shape: f32[1,128], index: 5, kind: input, shape index: {}]   ;;  %s981_s2 = inlined_call_operand.vmem [shape: f32[1,128], index: 2, kind: input, shape index: {}]   ;;  %s982_s6 = inlined_call_operand.vmem [shape: f32[1,128], index: 6, kind: input, shape index: {}]   ;;  %s983_s7 = inlined_call_operand.vmem [shape: f32[128,128], index: 7, kind: output, shape index: {}]  }
   0x1   :  { %v697_v0 = vld [vmem:[%s976_s4] sm:$0xff]   ;;  %v699_v2 = vld [vmem:[%s976_s4 + $0x8] sm:$0xff]   ;;  %v701_v4 = vld [vmem:[%s976_s4 + $0x10] sm:$0xff]  }
   0x2   :  { %v698_v1 = vld [vmem:[%s977_s1] sm:$0xff]   ;;  %633 = vmatprep.subr.bf16.mxu0 %v697_v0  ;;  %v700_v3 = vld [vmem:[%s977_s1 + $0x8] sm:$0xff]   ;;  %v702_v5 = vld [vmem:[%s977_s1 + $0x10] sm:$0xff]  }
   0x3   :  { %665 = vmatprep.subr.bf16.mxu1 %v698_v1  ;;  %634 = vmatpush3.bf16.msra.mxu0 %v697_v0  ;;  %v703_v6 = vld [vmem:[%s976_s4 + $0x18] sm:$0xff]   ;;  %v705_v8 = vld [vmem:[%s976_s4 + $0x20] sm:$0xff]   ;;  %v707_v10 = vld [vmem:[%s976_s4 + $0x28] sm:$0xff]  }
   0x4   :  { %666 = vmatpush3.bf16.msra.mxu1 %v698_v1  ;;  %635 = vmatprep.subr.bf16.mxu0 %v699_v2  ;;  %v704_v7 = vld [vmem:[%s977_s1 + $0x18] sm:$0xff]   ;;  %v706_v9 = vld [vmem:[%s977_s1 + $0x20] sm:$0xff]   ;;  %v708_v11 = vld [vmem:[%s977_s1 + $0x28] sm:$0xff]  }
   0x5   :  { %667 = vmatprep.subr.bf16.mxu1 %v700_v3  ;;  %v713_v12 = vld [vmem:[%s978_s3] sm:$0xff]   ;;  %v709_v14 = vld [vmem:[%s976_s4 + $0x30] sm:$0xff]   ;;  %v711_v16 = vld [vmem:[%s976_s4 + $0x38] sm:$0xff]  }
   0x6   :  { %v714_v13 = vld [vmem:[%s979_s0] sm:$0xff]   ;;  %649 = vmatprep.mubr.bf16.mxu0 %v713_v12  ;;  %v710_v15 = vld [vmem:[%s977_s1 + $0x30] sm:$0xff]   ;;  %v712_v17 = vld [vmem:[%s977_s1 + $0x38] sm:$0xff]  }
   0x7   :  { %636 = vmatpush3.bf16.msra.mxu0 %v699_v2  ;;  %681 = vmatprep.mubr.bf16.mxu1 %v714_v13  ;;  %v715_v18 = vld [vmem:[%s978_s3 + $0x8] sm:$0xff]   ;;  %v717_v20 = vld [vmem:[%s978_s3 + $0x10] sm:$0xff]   ;;  %v719_v22 = vld [vmem:[%s978_s3 + $0x18] sm:$0xff]  }
   0x8   :  { %668 = vmatpush3.bf16.msra.mxu1 %v700_v3  ;;  %637 = vmatprep.subr.bf16.mxu0 %v701_v4  ;;  %v716_v19 = vld [vmem:[%s979_s0 + $0x8] sm:$0xff]   ;;  %v718_v21 = vld [vmem:[%s979_s0 + $0x10] sm:$0xff]   ;;  %v720_v23 = vld [vmem:[%s979_s0 + $0x18] sm:$0xff]  }
   0x9   :  { %669 = vmatprep.subr.bf16.mxu1 %v702_v5  ;;  %v721_v24 = vld [vmem:[%s978_s3 + $0x20] sm:$0xff]   ;;  %v723_v26 = vld [vmem:[%s978_s3 + $0x28] sm:$0xff]   ;;  %v725_v28 = vld [vmem:[%s978_s3 + $0x30] sm:$0xff]  }
   0xa   :  { %v722_v25 = vld [vmem:[%s979_s0 + $0x20] sm:$0xff]   ;;  %v724_v27 = vld [vmem:[%s979_s0 + $0x28] sm:$0xff]   ;;  %v726_v29 = vld [vmem:[%s979_s0 + $0x30] sm:$0xff]  }
   0xb   :  { %638 = vmatpush3.bf16.msra.mxu0 %v701_v4  ;;  %v727_v30 = vld [vmem:[%s978_s3 + $0x38] sm:$0xff]   ;;  %v868_v32 = vld [vmem:[%s980_s5] ss:$0 sm:$0xff] }
   0xc   :  { %670 = vmatpush3.bf16.msra.mxu1 %v702_v5  ;;  %639 = vmatprep.subr.bf16.mxu0 %v703_v6  ;;  %v728_v31 = vld [vmem:[%s979_s0 + $0x38] sm:$0xff]   ;;  %v873_v33 = vld [vmem:[%s981_s2] ss:$0 sm:$0xff] }
   0xd   :  { %671 = vmatprep.subr.bf16.mxu1 %v704_v7  ;;  %v881_v42 = vld [vmem:[%s982_s6] ss:$0 sm:$0xff] }
   0xf   :  { %640 = vmatpush3.bf16.msra.mxu0 %v703_v6 }
  0x10   :  { %672 = vmatpush3.bf16.msra.mxu1 %v704_v7  ;;  %641 = vmatprep.subr.bf16.mxu0 %v705_v8 }
  0x11   :  { %673 = vmatprep.subr.bf16.mxu1 %v706_v9 }
  0x13   :  { %642 = vmatpush3.bf16.msra.mxu0 %v705_v8 }
  0x14   :  { %674 = vmatpush3.bf16.msra.mxu1 %v706_v9  ;;  %643 = vmatprep.subr.bf16.mxu0 %v707_v10 }
  0x15   :  { %675 = vmatprep.subr.bf16.mxu1 %v708_v11 }
  0x17   :  { %644 = vmatpush3.bf16.msra.mxu0 %v707_v10 }
  0x18   :  { %676 = vmatpush3.bf16.msra.mxu1 %v708_v11  ;;  %645 = vmatprep.subr.bf16.mxu0 %v709_v14 }
  0x19   :  { %677 = vmatprep.subr.bf16.mxu1 %v710_v15 }
  0x1b   :  { %646 = vmatpush3.bf16.msra.mxu0 %v709_v14 }
  0x1c   :  { %678 = vmatpush3.bf16.msra.mxu1 %v710_v15  ;;  %647 = vmatprep.subr.bf16.mxu0 %v711_v16 }
  0x1d   :  { %679 = vmatprep.subr.bf16.mxu1 %v712_v17 }
  0x1f   :  { %648 = vmatpush3.bf16.msra.mxu0 %v711_v16 }
  0x20   :  { %680 = vmatpush3.bf16.msra.mxu1 %v712_v17 }
  0x22   :  { %650 = vmatmul.mubr.bf16.vlgmr.msra.gmra.mrb[0].mxu0 %v715_v18 }
  0x23   :  { %682 = vmatmul.mubr.bf16.vlgmr.msra.gmra.mrb[0].mxu1 %v716_v19  ;;  %653 = vmatprep.mubr.bf16.mxu0 %v717_v20 }
  0x24   :  { %685 = vmatprep.mubr.bf16.mxu1 %v718_v21 }
  0x2a   :  { %654 = vmatmul.mubr.bf16.gmra.mrb[4].mxu0 %v719_v22 }
  0x2b   :  { %686 = vmatmul.mubr.bf16.gmra.mrb[4].mxu1 %v720_v23  ;;  %657 = vmatprep.mubr.bf16.mxu0 %v721_v24 }
  0x2c   :  { %689 = vmatprep.mubr.bf16.mxu1 %v722_v25 }
  0x32   :  { %658 = vmatmul.mubr.bf16.gmra.mrb[8].mxu0 %v723_v26 }
  0x33   :  { %690 = vmatmul.mubr.bf16.gmra.mrb[8].mxu1 %v724_v27  ;;  %661 = vmatprep.mubr.bf16.mxu0 %v725_v28 }
  0x34   :  { %693 = vmatprep.mubr.bf16.mxu1 %v726_v29 }
  0x3a   :  { %662 = vmatmul.mubr.bf16.gmra.mrb[12].mxu0 %v727_v30 }
  0x3b   :  { %694 = vmatmul.mubr.bf16.gmra.mrb[12].mxu1 %v728_v31 }
  0xf5   :  { %v651_v34 = vpop.f32.mrb[0].mxu0 }
  0xf6   :  { %v493_v35 = vmul.f32 %v651_v34, %v868_v32  ;;  %v683_v36 = vpop.f32.mrb[0].mxu1  ;;  %v221_v37 = vpop.f32.mrb[1].mxu0 }
  0xf7   :  { %v430_v38 = vadd.f32 %v683_v36, %v873_v33  ;;  %v491_v39 = vmul.f32 %v868_v32, %v221_v37  ;;  %v421_v40 = vpop.f32.mrb[1].mxu1  ;;  %v652_v41 = vpop.f32.mrb[2].mxu0 }
  0xf8   :  { %v422_v43 = vadd.f32 %v873_v33, %v421_v40  ;;  %v494_v44 = vmul.f32 %v652_v41, %v868_v32  ;;  %v684_v45 = vpop.f32.mrb[2].mxu1  ;;  %v224_v46 = vpop.f32.mrb[3].mxu0 }
  0xf9   :  { %v509_v47 = vadd.f32 %v493_v35, %v430_v38  ;;  %v433_v48 = vadd.f32 %v684_v45, %v873_v33  ;;  %v492_v49 = vmul.f32 %v868_v32, %v224_v46  ;;  %v424_v50 = vpop.f32.mrb[3].mxu1 }
  0xfa   :  { %v507_v51 = vadd.f32 %v491_v39, %v422_v43  ;;  %v425_v52 = vadd.f32 %v873_v33, %v424_v50 }
  0xfb   :  { %v532_v53 = vadd.f32 %v881_v42, %v509_v47  ;;  %v510_v54 = vadd.f32 %v494_v44, %v433_v48 }
  0xfc   :  { %v530_v55 = vadd.f32 %v881_v42, %v507_v51  ;;  %v508_v56 = vadd.f32 %v492_v49, %v425_v52 }
  0xfd   :  { %548 = vst [vmem:[%s983_s7 + $0x10] sm:$0xff] %v532_v53  ;;  %v533_v57 = vadd.f32 %v881_v42, %v510_v54  ;;  %v655_v58 = vpop.f32.mrb[4].mxu0 }
  0xfe   :  { %546 = vst [vmem:[%s983_s7] sm:$0xff] %v530_v55  ;;  %v531_v59 = vadd.f32 %v881_v42, %v508_v56  ;;  %v497_v60 = vmul.f32 %v655_v58, %v868_v32  ;;  %v687_v61 = vpop.f32.mrb[4].mxu1  ;;  %v237_v62 = vpop.f32.mrb[5].mxu0 }
  0xff   :  { %549 = vst [vmem:[%s983_s7 + $0x18] sm:$0xff] %v533_v57  ;;  %v446_v63 = vadd.f32 %v687_v61, %v873_v33  ;;  %v495_v0 = vmul.f32 %v868_v32, %v237_v62  ;;  %v437_v1 = vpop.f32.mrb[5].mxu1  ;;  %v656_v2 = vpop.f32.mrb[6].mxu0 }
 0x100   :  { %547 = vst [vmem:[%s983_s7 + $0x8] sm:$0xff] %v531_v59  ;;  %v438_v3 = vadd.f32 %v873_v33, %v437_v1  ;;  %v498_v4 = vmul.f32 %v656_v2, %v868_v32  ;;  %v688_v5 = vpop.f32.mrb[6].mxu1  ;;  %v240_v6 = vpop.f32.mrb[7].mxu0 }
 0x101   :  { %v513_v7 = vadd.f32 %v497_v60, %v446_v63  ;;  %v449_v8 = vadd.f32 %v688_v5, %v873_v33  ;;  %v496_v9 = vmul.f32 %v868_v32, %v240_v6  ;;  %v440_v10 = vpop.f32.mrb[7].mxu1 }
 0x102   :  { %v511_v11 = vadd.f32 %v495_v0, %v438_v3  ;;  %v441_v12 = vadd.f32 %v873_v33, %v440_v10 }
 0x103   :  { %v536_v13 = vadd.f32 %v881_v42, %v513_v7  ;;  %v514_v14 = vadd.f32 %v498_v4, %v449_v8 }
 0x104   :  { %v534_v15 = vadd.f32 %v881_v42, %v511_v11  ;;  %v512_v16 = vadd.f32 %v496_v9, %v441_v12 }
 0x105   :  { %552 = vst [vmem:[%s983_s7 + $0x30] sm:$0xff] %v536_v13  ;;  %v537_v17 = vadd.f32 %v881_v42, %v514_v14  ;;  %v659_v18 = vpop.f32.mrb[8].mxu0 }
 0x106   :  { %550 = vst [vmem:[%s983_s7 + $0x20] sm:$0xff] %v534_v15  ;;  %v535_v19 = vadd.f32 %v881_v42, %v512_v16  ;;  %v501_v20 = vmul.f32 %v659_v18, %v868_v32  ;;  %v691_v21 = vpop.f32.mrb[8].mxu1  ;;  %v253_v22 = vpop.f32.mrb[9].mxu0 }
 0x107   :  { %553 = vst [vmem:[%s983_s7 + $0x38] sm:$0xff] %v537_v17  ;;  %v462_v23 = vadd.f32 %v691_v21, %v873_v33  ;;  %v499_v24 = vmul.f32 %v868_v32, %v253_v22  ;;  %v453_v25 = vpop.f32.mrb[9].mxu1  ;;  %v660_v26 = vpop.f32.mrb[10].mxu0 }
 0x108   :  { %551 = vst [vmem:[%s983_s7 + $0x28] sm:$0xff] %v535_v19  ;;  %v454_v27 = vadd.f32 %v873_v33, %v453_v25  ;;  %v502_v28 = vmul.f32 %v660_v26, %v868_v32  ;;  %v692_v29 = vpop.f32.mrb[10].mxu1  ;;  %v256_v30 = vpop.f32.mrb[11].mxu0 }
 0x109   :  { %v517_v31 = vadd.f32 %v501_v20, %v462_v23  ;;  %v465_v34 = vadd.f32 %v692_v29, %v873_v33  ;;  %v500_v35 = vmul.f32 %v868_v32, %v256_v30  ;;  %v456_v36 = vpop.f32.mrb[11].mxu1 }
 0x10a   :  { %v515_v37 = vadd.f32 %v499_v24, %v454_v27  ;;  %v457_v38 = vadd.f32 %v873_v33, %v456_v36 }
 0x10b   :  { %v540_v39 = vadd.f32 %v881_v42, %v517_v31  ;;  %v518_v40 = vadd.f32 %v502_v28, %v465_v34 }
 0x10c   :  { %v538_v41 = vadd.f32 %v881_v42, %v515_v37  ;;  %v516_v43 = vadd.f32 %v500_v35, %v457_v38 }
 0x10d   :  { %556 = vst [vmem:[%s983_s7 + $0x50] sm:$0xff] %v540_v39  ;;  %v541_v44 = vadd.f32 %v881_v42, %v518_v40  ;;  %v663_v45 = vpop.f32.mrb[12].mxu0 }
 0x10e   :  { %554 = vst [vmem:[%s983_s7 + $0x40] sm:$0xff] %v538_v41  ;;  %v539_v46 = vadd.f32 %v881_v42, %v516_v43  ;;  %v505_v47 = vmul.f32 %v663_v45, %v868_v32  ;;  %v695_v48 = vpop.f32.mrb[12].mxu1  ;;  %v269_v49 = vpop.f32.mrb[13].mxu0 }
 0x10f   :  { %557 = vst [vmem:[%s983_s7 + $0x58] sm:$0xff] %v541_v44  ;;  %v478_v50 = vadd.f32 %v695_v48, %v873_v33  ;;  %v503_v51 = vmul.f32 %v868_v32, %v269_v49  ;;  %v469_v52 = vpop.f32.mrb[13].mxu1  ;;  %v664_v53 = vpop.f32.mrb[14].mxu0 }
 0x110   :  { %555 = vst [vmem:[%s983_s7 + $0x48] sm:$0xff] %v539_v46  ;;  %v470_v54 = vadd.f32 %v873_v33, %v469_v52  ;;  %v506_v55 = vmul.f32 %v664_v53, %v868_v32  ;;  %v696_v56 = vpop.f32.mrb[14].mxu1  ;;  %v272_v57 = vpop.f32.mrb[15].mxu0 }
 0x111   :  { %v521_v58 = vadd.f32 %v505_v47, %v478_v50  ;;  %v481_v59 = vadd.f32 %v696_v56, %v873_v33  ;;  %v504_v60 = vmul.f32 %v868_v32, %v272_v57  ;;  %v472_v61 = vpop.f32.mrb[15].mxu1 }
 0x112   :  { %v519_v62 = vadd.f32 %v503_v51, %v470_v54  ;;  %v473_v63 = vadd.f32 %v873_v33, %v472_v61 }
 0x113   :  { %v544_v0 = vadd.f32 %v881_v42, %v521_v58  ;;  %v522_v1 = vadd.f32 %v506_v55, %v481_v59 }
 0x114   :  { %v542_v2 = vadd.f32 %v881_v42, %v519_v62  ;;  %v520_v3 = vadd.f32 %v504_v60, %v473_v63 }
 0x115   :  { %560 = vst [vmem:[%s983_s7 + $0x70] sm:$0xff] %v544_v0  ;;  %v545_v4 = vadd.f32 %v881_v42, %v522_v1 }
 0x116   :  { %558 = vst [vmem:[%s983_s7 + $0x60] sm:$0xff] %v542_v2  ;;  %v543_v32 = vadd.f32 %v881_v42, %v520_v3 }
 0x117   :  { %561 = vst [vmem:[%s983_s7 + $0x78] sm:$0xff] %v545_v4 }
 0x118   :  { %559 = vst [vmem:[%s983_s7 + $0x68] sm:$0xff] %v543_v32 }

</bundles_post_ra>
